<compile_context>
chip_gen: v7x
topology: tpu7x:2x2x1
jax: 0.10.0
libtpu: 0.0.40
codegen_flags: <defaults>
</compile_context>

<pallas_src>
import functools

import jax
import jax.numpy as jnp
from jax import lax
from jax.experimental import pallas as pl
from jax.experimental.pallas import tpu as pltpu

_EPS = 1e-8


def _round_up(x, m):
    return ((x + m - 1) // m) * m


def _soft_cross_entropy(logits, target):
    """-sum_c target[n,c] * log_softmax(logits)[n,c]  -> (TN, 1)."""
    m = jnp.max(logits, axis=-1, keepdims=True)
    z = logits - m
    lse = jnp.log(jnp.sum(jnp.exp(z), axis=-1, keepdims=True))
    return -jnp.sum(target * (z - lse), axis=-1, keepdims=True)


def _proto_contrastive_kernel(inv_temperature, sim_momentum, score_momentum,
                              n_total,
                              protos_ref, bank_ref, scores_ref, labels_ref,
                              w_ref, psum_ref):
    tn = protos_ref.shape[0]
    c = bank_ref.shape[0]

    protos = protos_ref[...].astype(jnp.float32)   # (TN, D) cast in-kernel
    bank = bank_ref[...].astype(jnp.float32)       # (C, D)  raw prototypes (resident)
    scores = scores_ref[...].astype(jnp.float32)   # (TN, C)
    labels = labels_ref[...]                       # (TN, 1) int32
    w = w_ref[...].astype(jnp.float32)             # (TN, 1)

    # Mask rows of a ragged last tile.
    row0 = pl.program_id(0) * tn
    rid = lax.broadcasted_iota(jnp.int32, (tn, 1), 0) + row0
    valid = rid < n_total

    # --- prototype-bank work fused in-kernel (tiny: C x D, ~free per tile) ---
    bank_ssq = jnp.sum(bank * bank, axis=-1, keepdims=True)
    bank_n = bank * lax.rsqrt(jnp.maximum(bank_ssq, _EPS * _EPS))
    # TODO(synk): PrototypeBank.computeSimilarityClasses() body is not shown in
    # the reference; assumed to be the prototype-prototype cosine-similarity matrix.
    sim_pc = lax.dot_general(bank_n, bank_n, (((1,), (1,)), ((), ())),
                             preferred_element_type=jnp.float32)        # (C, C)

    # --- per-proposal cosine similarity on the MXU ---------------------------
    # Row L2-normalization via rsqrt (EUP path); eps clamp matches max(||x||, eps).
    ssq = jnp.sum(protos * protos, axis=-1, keepdims=True)
    protos_n = protos * lax.rsqrt(jnp.maximum(ssq, _EPS * _EPS))
    # A·Bᵀ via dot_general dimension_numbers -> no materialized transpose.
    sim = lax.dot_general(protos_n, bank_n, (((1,), (1,)), ((), ())),
                          preferred_element_type=jnp.float32)           # (TN, C)
    numerator = sim * inv_temperature

    # One-hot target built in-kernel from int32 labels (no dense (N,C) HBM input).
    onehot = (lax.broadcasted_iota(jnp.int32, (tn, c), 1) == labels
              ).astype(jnp.float32)                                     # (TN, C)
    mixed = jnp.dot(onehot, sim_pc, preferred_element_type=jnp.float32)

    target_proto = sim_momentum * onehot + (1.0 - sim_momentum) * mixed
    target_score = score_momentum * onehot + (1.0 - score_momentum) * mixed

    lp = w * _soft_cross_entropy(numerator, target_proto)               # (TN, 1)
    ls = w * _soft_cross_entropy(scores, target_score)                  # (TN, 1)

    lp_sum = jnp.sum(jnp.where(valid, lp, 0.0))                         # scalar
    ls_sum = jnp.sum(jnp.where(valid, ls, 0.0))                         # scalar

    # Write the two per-tile partial sums into one full (8, 128) lane-aligned
    # block: a single unmasked store instead of narrow (TN, 1) masked stores.
    sub = lax.broadcasted_iota(jnp.int32, (1, 8, 128), 1)
    lane = lax.broadcasted_iota(jnp.int32, (1, 8, 128), 2)
    psum_ref[...] = jnp.where((sub == 0) & (lane == 0), lp_sum,
                              jnp.where((sub == 0) & (lane == 1), ls_sum, 0.0))


def prototype_contrastive_loss(protos, prototypes, scores, labels, loss_weight,
                               *, temperature, sim_momentum, score_momentum,
                               block_rows=256):
    n, d = protos.shape
    c, _ = prototypes.shape
    assert scores.shape == (n, c)

    labels2 = labels.astype(jnp.int32).reshape(n, 1)
    w2 = loss_weight.astype(jnp.float32).reshape(n, 1)

    tn = int(min(block_rows, _round_up(n, 8)))
    num_tiles = pl.cdiv(n, tn)

    kernel = functools.partial(
        _proto_contrastive_kernel,
        float(1.0 / temperature), float(sim_momentum), float(score_momentum), n)

    psums = pl.pallas_call(
        kernel,
        grid=(num_tiles,),
        in_specs=[
            pl.BlockSpec((tn, d), lambda i: (i, 0)),   # protos     (streamed)
            pl.BlockSpec((c, d), lambda i: (0, 0)),    # prototypes (tiny, resident)
            pl.BlockSpec((tn, c), lambda i: (i, 0)),   # scores     (streamed)
            pl.BlockSpec((tn, 1), lambda i: (i, 0)),   # labels     (int32)
            pl.BlockSpec((tn, 1), lambda i: (i, 0)),   # weights
        ],
        out_specs=pl.BlockSpec((1, 8, 128), lambda i: (i, 0, 0)),
        out_shape=jax.ShapeDtypeStruct((num_tiles, 8, 128), jnp.float32),
        compiler_params=pltpu.CompilerParams(
            dimension_semantics=("parallel",)),        # v7x: shard tiles over 2 TCs
    )(protos, prototypes, scores, labels2, w2)

    inv_n = 1.0 / n
    loss_proto = jnp.sum(psums[:, 0, 0]) * inv_n
    loss_score = jnp.sum(psums[:, 0, 1]) * inv_n
    return loss_proto, loss_score


def _reference(protos, prototypes, scores, labels, loss_weight,
               temperature, sim_momentum, score_momentum):
    protos = protos.astype(jnp.float32)
    prototypes = prototypes.astype(jnp.float32)
    scores = scores.astype(jnp.float32)
    c = prototypes.shape[0]
    pn = protos / jnp.maximum(jnp.linalg.norm(protos, axis=-1, keepdims=True), _EPS)
    bn = prototypes / jnp.maximum(jnp.linalg.norm(prototypes, axis=-1, keepdims=True), _EPS)
    sim = pn @ bn.T
    numerator = sim / temperature
    sim_pc = bn @ bn.T
    target = jax.nn.one_hot(labels, c, dtype=jnp.float32)
    mixed = target @ sim_pc
    tgt_p = sim_momentum * target + (1 - sim_momentum) * mixed
    tgt_s = score_momentum * target + (1 - score_momentum) * mixed

    def ce(logits, tgt):
        logp = jax.nn.log_softmax(logits, axis=-1)
        return -jnp.sum(tgt * logp, axis=-1)

    w = loss_weight.astype(jnp.float32)
    return jnp.mean(w * ce(numerator, tgt_p)), jnp.mean(w * ce(scores, tgt_s))


if __name__ == "__main__":
    # Small detection-style problem: NUM_CLASSES=20 -> class_num=21,
    # feature_num=256, 512 proposals; block_rows=128 -> grid of 4 pipelined tiles.
    NUM_CLASSES = 20
    class_num = NUM_CLASSES + 1
    feature_num = 256
    n_proposals = 512
    temperature = 0.1
    sim_momentum = 0.9
    score_momentum = 0.7

    key = jax.random.PRNGKey(0)
    k1, k2, k3, k4, k5 = jax.random.split(key, 5)
    protos = jax.random.normal(k1, (n_proposals, feature_num), dtype=jnp.float32)
    prototypes = jax.random.normal(k2, (class_num, feature_num), dtype=jnp.float32)
    scores = jax.random.normal(k3, (n_proposals, class_num), dtype=jnp.float32)
    labels = jax.random.randint(k4, (n_proposals,), 0, class_num, dtype=jnp.int32)
    loss_weight = jax.random.uniform(k5, (n_proposals,), dtype=jnp.float32)

    loss_fn = jax.jit(functools.partial(
        prototype_contrastive_loss,
        temperature=temperature,
        sim_momentum=sim_momentum,
        score_momentum=score_momentum,
        block_rows=128))

    loss_proto, loss_score = loss_fn(protos, prototypes, scores, labels, loss_weight)
    jax.block_until_ready((loss_proto, loss_score))

    ref_p, ref_s = _reference(protos, prototypes, scores, labels, loss_weight,
                              temperature, sim_momentum, score_momentum)
    assert jnp.allclose(loss_proto, ref_p, rtol=2e-3, atol=1e-4), (loss_proto, ref_p)
    assert jnp.allclose(loss_score, ref_s, rtol=2e-3, atol=1e-4), (loss_score, ref_s)

    print("KERNEL_OK")
</pallas_src>

<mosaic_0001>
module attributes {stable_mosaic.version = 11 : i64} {
  func.func @_proto_contrastive_kernel(%arg0: i32, %arg1: memref<128x256xf32, #tpu.memory_space<vmem>>, %arg2: memref<21x256xf32, #tpu.memory_space<vmem>>, %arg3: memref<128x21xf32, #tpu.memory_space<vmem>>, %arg4: memref<128x1xi32, #tpu.memory_space<vmem>>, %arg5: memref<128x1xf32, #tpu.memory_space<vmem>>, %arg6: memref<1x8x128xf32, #tpu.memory_space<vmem>>) attributes {dimension_semantics = [#tpu.dimension_semantics<parallel>], iteration_bounds = array<i64: 4>, scalar_prefetch = 0 : i64, scratch_operands = 0 : i64, tpu.core_type = #tpu.core_type<tc>, window_params = [{transform_indices = @transform_0, window_bounds = array<i64: 128, 256>}, {pipeline_mode = #tpu.pipeline_mode<synchronous>, transform_indices = @transform_1, window_bounds = array<i64: 21, 256>}, {transform_indices = @transform_2, window_bounds = array<i64: 128, 21>}, {transform_indices = @transform_3, window_bounds = array<i64: 128, 1>}, {transform_indices = @transform_4, window_bounds = array<i64: 128, 1>}, {transform_indices = @transform_5, window_bounds = array<i64: 1, 8, 128>}]} {
    %c0 = arith.constant 0 : index
    %c0_0 = arith.constant 0 : index
    %0 = vector.load %arg1[%c0, %c0_0] : memref<128x256xf32, #tpu.memory_space<vmem>>, vector<128x256xf32>
    %c0_1 = arith.constant 0 : index
    %c0_2 = arith.constant 0 : index
    %1 = vector.load %arg2[%c0_1, %c0_2] : memref<21x256xf32, #tpu.memory_space<vmem>>, vector<21x256xf32>
    %c0_3 = arith.constant 0 : index
    %c0_4 = arith.constant 0 : index
    %2 = vector.load %arg3[%c0_3, %c0_4] : memref<128x21xf32, #tpu.memory_space<vmem>>, vector<128x21xf32>
    %c0_5 = arith.constant 0 : index
    %c0_6 = arith.constant 0 : index
    %3 = vector.load %arg4[%c0_5, %c0_6] : memref<128x1xi32, #tpu.memory_space<vmem>>, vector<128x1xi32>
    %c0_7 = arith.constant 0 : index
    %c0_8 = arith.constant 0 : index
    %4 = vector.load %arg5[%c0_7, %c0_8] : memref<128x1xf32, #tpu.memory_space<vmem>>, vector<128x1xf32>
    %c128_i32 = arith.constant 128 : i32
    %5 = arith.muli %arg0, %c128_i32 : i32
    %6 = tpu.iota {dimensions = array<i32: 0>} : vector<128x1xi32>
    %7 = vector.broadcast %5 : i32 to vector<128x1xi32>
    %8 = arith.addi %6, %7 : vector<128x1xi32>
    %c512_i32 = arith.constant 512 : i32
    %9 = vector.broadcast %c512_i32 : i32 to vector<128x1xi32>
    %10 = arith.cmpi slt, %8, %9 : vector<128x1xi32>
    %11 = arith.mulf %1, %1 : vector<21x256xf32>
    %cst = arith.constant dense<0.000000e+00> : vector<21xf32>
    %12 = vector.multi_reduction <add>, %11, %cst [1] : vector<21x256xf32> to vector<21xf32>
    %13 = vector.shape_cast %12 : vector<21xf32> to vector<21x1xf32>
    %cst_9 = arith.constant 1.000000e-16 : f32
    %14 = vector.broadcast %cst_9 : f32 to vector<21x1xf32>
    %15 = arith.maximumf %13, %14 : vector<21x1xf32>
    %16 = math.rsqrt %15 : vector<21x1xf32>
    %17 = vector.broadcast %16 : vector<21x1xf32> to vector<21x256xf32>
    %18 = arith.mulf %1, %17 : vector<21x256xf32>
    %cst_10 = arith.constant dense<0.000000e+00> : vector<21x21xf32>
    %19 = tpu.matmul %18, %18, %cst_10 {dimension_numbers = #tpu.dot_dimension_numbers<[1], [1], [0], [0], [0, 0, 1, 0], [], []>} : vector<21x256xf32>, vector<21x256xf32>, vector<21x21xf32> -> vector<21x21xf32>
    %20 = arith.mulf %0, %0 : vector<128x256xf32>
    %cst_11 = arith.constant dense<0.000000e+00> : vector<128xf32>
    %21 = vector.multi_reduction <add>, %20, %cst_11 [1] : vector<128x256xf32> to vector<128xf32>
    %22 = vector.shape_cast %21 : vector<128xf32> to vector<128x1xf32>
    %cst_12 = arith.constant 1.000000e-16 : f32
    %23 = vector.broadcast %cst_12 : f32 to vector<128x1xf32>
    %24 = arith.maximumf %22, %23 : vector<128x1xf32>
    %25 = math.rsqrt %24 : vector<128x1xf32>
    %26 = vector.broadcast %25 : vector<128x1xf32> to vector<128x256xf32>
    %27 = arith.mulf %0, %26 : vector<128x256xf32>
    %cst_13 = arith.constant dense<0.000000e+00> : vector<128x21xf32>
    %28 = tpu.matmul %27, %18, %cst_13 {dimension_numbers = #tpu.dot_dimension_numbers<[1], [1], [0], [0], [0, 0, 1, 0], [], []>} : vector<128x256xf32>, vector<21x256xf32>, vector<128x21xf32> -> vector<128x21xf32>
    %cst_14 = arith.constant 1.000000e+01 : f32
    %29 = vector.broadcast %cst_14 : f32 to vector<128x21xf32>
    %30 = arith.mulf %28, %29 : vector<128x21xf32>
    %31 = tpu.iota {dimensions = array<i32: 1>} : vector<128x21xi32>
    %32 = vector.broadcast %3 : vector<128x1xi32> to vector<128x21xi32>
    %33 = arith.cmpi eq, %31, %32 : vector<128x21xi32>
    %34 = arith.extui %33 : vector<128x21xi1> to vector<128x21xi32>
    %35 = arith.sitofp %34 : vector<128x21xi32> to vector<128x21xf32>
    %cst_15 = arith.constant dense<0.000000e+00> : vector<128x21xf32>
    %36 = tpu.matmul %35, %19, %cst_15 {dimension_numbers = #tpu.dot_dimension_numbers<[1], [0], [0], [1], [0, 0, 1, 1], [], []>} : vector<128x21xf32>, vector<21x21xf32>, vector<128x21xf32> -> vector<128x21xf32>
    %cst_16 = arith.constant 0.899999976 : f32
    %37 = vector.broadcast %cst_16 : f32 to vector<128x21xf32>
    %38 = arith.mulf %37, %35 : vector<128x21xf32>
    %cst_17 = arith.constant 1.000000e-01 : f32
    %39 = vector.broadcast %cst_17 : f32 to vector<128x21xf32>
    %40 = arith.mulf %39, %36 : vector<128x21xf32>
    %41 = arith.addf %38, %40 : vector<128x21xf32>
    %cst_18 = arith.constant 0.699999988 : f32
    %42 = vector.broadcast %cst_18 : f32 to vector<128x21xf32>
    %43 = arith.mulf %42, %35 : vector<128x21xf32>
    %cst_19 = arith.constant 3.000000e-01 : f32
    %44 = vector.broadcast %cst_19 : f32 to vector<128x21xf32>
    %45 = arith.mulf %44, %36 : vector<128x21xf32>
    %46 = arith.addf %43, %45 : vector<128x21xf32>
    %cst_20 = arith.constant dense<0xFF800000> : vector<128xf32>
    %47 = vector.multi_reduction <maximumf>, %30, %cst_20 [1] : vector<128x21xf32> to vector<128xf32>
    %48 = vector.shape_cast %47 : vector<128xf32> to vector<128x1xf32>
    %49 = vector.broadcast %48 : vector<128x1xf32> to vector<128x21xf32>
    %50 = arith.subf %30, %49 : vector<128x21xf32>
    %51 = math.exp %50 : vector<128x21xf32>
    %cst_21 = arith.constant dense<0.000000e+00> : vector<128xf32>
    %52 = vector.multi_reduction <add>, %51, %cst_21 [1] : vector<128x21xf32> to vector<128xf32>
    %53 = vector.shape_cast %52 : vector<128xf32> to vector<128x1xf32>
    %54 = math.log %53 : vector<128x1xf32>
    %55 = vector.broadcast %54 : vector<128x1xf32> to vector<128x21xf32>
    %56 = arith.subf %50, %55 : vector<128x21xf32>
    %57 = arith.mulf %41, %56 : vector<128x21xf32>
    %cst_22 = arith.constant dense<0.000000e+00> : vector<128xf32>
    %58 = vector.multi_reduction <add>, %57, %cst_22 [1] : vector<128x21xf32> to vector<128xf32>
    %59 = vector.shape_cast %58 : vector<128xf32> to vector<128x1xf32>
    %cst_23 = arith.constant 0.000000e+00 : f32
    %60 = vector.broadcast %cst_23 : f32 to vector<128x1xf32>
    %61 = arith.subf %60, %59 : vector<128x1xf32>
    %62 = arith.mulf %4, %61 : vector<128x1xf32>
    %cst_24 = arith.constant dense<0xFF800000> : vector<128xf32>
    %63 = vector.multi_reduction <maximumf>, %2, %cst_24 [1] : vector<128x21xf32> to vector<128xf32>
    %64 = vector.shape_cast %63 : vector<128xf32> to vector<128x1xf32>
    %65 = vector.broadcast %64 : vector<128x1xf32> to vector<128x21xf32>
    %66 = arith.subf %2, %65 : vector<128x21xf32>
    %67 = math.exp %66 : vector<128x21xf32>
    %cst_25 = arith.constant dense<0.000000e+00> : vector<128xf32>
    %68 = vector.multi_reduction <add>, %67, %cst_25 [1] : vector<128x21xf32> to vector<128xf32>
    %69 = vector.shape_cast %68 : vector<128xf32> to vector<128x1xf32>
    %70 = math.log %69 : vector<128x1xf32>
    %71 = vector.broadcast %70 : vector<128x1xf32> to vector<128x21xf32>
    %72 = arith.subf %66, %71 : vector<128x21xf32>
    %73 = arith.mulf %46, %72 : vector<128x21xf32>
    %cst_26 = arith.constant dense<0.000000e+00> : vector<128xf32>
    %74 = vector.multi_reduction <add>, %73, %cst_26 [1] : vector<128x21xf32> to vector<128xf32>
    %75 = vector.shape_cast %74 : vector<128xf32> to vector<128x1xf32>
    %cst_27 = arith.constant 0.000000e+00 : f32
    %76 = vector.broadcast %cst_27 : f32 to vector<128x1xf32>
    %77 = arith.subf %76, %75 : vector<128x1xf32>
    %78 = arith.mulf %4, %77 : vector<128x1xf32>
    %cst_28 = arith.constant 0.000000e+00 : f32
    %79 = vector.broadcast %cst_28 : f32 to vector<128x1xf32>
    %80 = arith.select %10, %62, %79 : vector<128x1xi1>, vector<128x1xf32>
    %81 = vector.shape_cast %80 : vector<128x1xf32> to vector<1x128x1xf32>
    %cst_29 = arith.constant dense<0.000000e+00> : vector<1xf32>
    %82 = vector.multi_reduction <add>, %81, %cst_29 [1, 2] : vector<1x128x1xf32> to vector<1xf32>
    %83 = vector.shape_cast %82 : vector<1xf32> to vector<1x1x1xf32>
    %84 = vector.extract %83[0, 0, 0] : f32 from vector<1x1x1xf32>
    %cst_30 = arith.constant 0.000000e+00 : f32
    %85 = vector.broadcast %cst_30 : f32 to vector<128x1xf32>
    %86 = arith.select %10, %78, %85 : vector<128x1xi1>, vector<128x1xf32>
    %87 = vector.shape_cast %86 : vector<128x1xf32> to vector<1x128x1xf32>
    %cst_31 = arith.constant dense<0.000000e+00> : vector<1xf32>
    %88 = vector.multi_reduction <add>, %87, %cst_31 [1, 2] : vector<1x128x1xf32> to vector<1xf32>
    %89 = vector.shape_cast %88 : vector<1xf32> to vector<1x1x1xf32>
    %90 = vector.extract %89[0, 0, 0] : f32 from vector<1x1x1xf32>
    %91 = tpu.iota {dimensions = array<i32: 1>} : vector<1x8x128xi32>
    %92 = tpu.iota {dimensions = array<i32: 2>} : vector<1x8x128xi32>
    %c0_i32 = arith.constant 0 : i32
    %93 = vector.broadcast %c0_i32 : i32 to vector<1x8x128xi32>
    %94 = arith.cmpi eq, %91, %93 : vector<1x8x128xi32>
    %c0_i32_32 = arith.constant 0 : i32
    %95 = vector.broadcast %c0_i32_32 : i32 to vector<1x8x128xi32>
    %96 = arith.cmpi eq, %92, %95 : vector<1x8x128xi32>
    %97 = arith.andi %94, %96 : vector<1x8x128xi1>
    %c0_i32_33 = arith.constant 0 : i32
    %98 = vector.broadcast %c0_i32_33 : i32 to vector<1x8x128xi32>
    %99 = arith.cmpi eq, %91, %98 : vector<1x8x128xi32>
    %c1_i32 = arith.constant 1 : i32
    %100 = vector.broadcast %c1_i32 : i32 to vector<1x8x128xi32>
    %101 = arith.cmpi eq, %92, %100 : vector<1x8x128xi32>
    %102 = arith.andi %99, %101 : vector<1x8x128xi1>
    %cst_34 = arith.constant 0.000000e+00 : f32
    %103 = vector.broadcast %90 : f32 to vector<1x8x128xf32>
    %104 = vector.broadcast %cst_34 : f32 to vector<1x8x128xf32>
    %105 = arith.select %102, %103, %104 : vector<1x8x128xi1>, vector<1x8x128xf32>
    %106 = vector.broadcast %84 : f32 to vector<1x8x128xf32>
    %107 = arith.select %97, %106, %105 : vector<1x8x128xi1>, vector<1x8x128xf32>
    %c0_35 = arith.constant 0 : index
    %c0_36 = arith.constant 0 : index
    %c0_37 = arith.constant 0 : index
    %108 = vector.load %arg6[%c0_35, %c0_36, %c0_37] : memref<1x8x128xf32, #tpu.memory_space<vmem>>, vector<1x8x128xf32>
    tpu.vector_store %arg6[%c0_35, %c0_36, %c0_37], %107 {strides = array<i32>} : memref<1x8x128xf32, #tpu.memory_space<vmem>>, vector<1x8x128xf32>,
    return
  }
  func.func @transform_0(%arg0: i32) -> (i32, i32) {
    %c0_i32 = arith.constant 0 : i32
    %c0_i32_0 = arith.constant 0 : i32
    return %arg0, %c0_i32 : i32, i32
  }
  func.func @transform_1(%arg0: i32) -> (i32, i32) {
    %c0_i32 = arith.constant 0 : i32
    %c0_i32_0 = arith.constant 0 : i32
    %c0_i32_1 = arith.constant 0 : i32
    return %c0_i32, %c0_i32_0 : i32, i32
  }
  func.func @transform_2(%arg0: i32) -> (i32, i32) {
    %c0_i32 = arith.constant 0 : i32
    %c0_i32_0 = arith.constant 0 : i32
    return %arg0, %c0_i32 : i32, i32
  }
  func.func @transform_3(%arg0: i32) -> (i32, i32) {
    %c0_i32 = arith.constant 0 : i32
    %c0_i32_0 = arith.constant 0 : i32
    return %arg0, %c0_i32 : i32, i32
  }
  func.func @transform_4(%arg0: i32) -> (i32, i32) {
    %c0_i32 = arith.constant 0 : i32
    %c0_i32_0 = arith.constant 0 : i32
    return %arg0, %c0_i32 : i32, i32
  }
  func.func @transform_5(%arg0: i32) -> (i32, i32, i32) {
    %c0_i32 = arith.constant 0 : i32
    %c0_i32_0 = arith.constant 0 : i32
    %c0_i32_1 = arith.constant 0 : i32
    return %arg0, %c0_i32, %c0_i32_0 : i32, i32, i32
  }
}

</mosaic_0001>

<bundles_post_ra>
// kernel: prototype_contrastive_loss.1
= control target key start
LH: loop header
LB: loop body
LE: loop exit
PB: predicated region body
PF: predicated region fallthrough
CT: control target
= control target key end

     0   :  { %s2364_s18 = smov 0   ;;  %s3519_s0 = inlined_call_operand.vmem [shape: f32[512,256], index: 0, kind: input, shape index: {}]   ;;  %s3520_s1 = inlined_call_operand.vmem [shape: f32[21,256], index: 1, kind: input, shape index: {}]   ;;  %s3521_s2 = inlined_call_operand.vmem [shape: f32[512,21], index: 2, kind: input, shape index: {}]   ;;  %s3522_s3 = inlined_call_operand.vmem [shape: s32[512,1], index: 3, kind: input, shape index: {}]   ;;  %s3523_s4 = inlined_call_operand.vmem [shape: f32[512,1], index: 4, kind: input, shape index: {}]   ;;  %s3524_s5 = inlined_call_operand.vmem [shape: f32[4,8,128], index: 5, kind: output, shape index: {}]  }
   0x1 LB: > { %s2370_s19 = sadd.s32 4294967295, %s2330_s18   ;;  %p2029_p0 = scmp.ge.s32.totalorder %s2330_s18, 1  ;;  %s2330_s18 = sphi %s2364_s18, %s15_s18  }
   0x2   : > { %p222_p1 = scmp.lt.s32.totalorder %s2330_s18, 5 }
   0x4   : > { %p223_p2 = pnand %p2029_p0, %p222_p1 }
   0x6   : > { %226 = sbr.rel (%p223_p2) target bundleno = 1142 (0x476), region = 40 }
   0xd   : > { %v2377_v0 = vld [vmem:[%s3520_s1] sm:$0xff]  ;;  %v2382_v1 = vld [vmem:[%s3520_s1 + $0x8] sm:$0xff]  ;;  %v2387_v2 = vld [vmem:[%s3520_s1 + $0x10] sm:$0xff]  ;;  %vm443_vm0 = vcmask 1044480   ;;  %s2030_s26 = sshll.u32 %s2370_s19, 4  ;;  %vm944_vm1 = vcmask 171008  }
   0xe   : > { %v431_v3 = vmul.f32 %v2377_v0, %v2377_v0  ;;  %v432_v4 = vmul.f32 %v2382_v1, %v2382_v1  ;;  %v2397_v5 = vld [vmem:[%s3520_s1 + $0x18] sm:$0xff]  ;;  %v433_v6 = vmul.f32 %v2387_v2, %v2387_v2  ;;  %v2404_v7 = vld [vmem:[%s3520_s1 + $0x20] sm:$0x1f]  ;;  %v2409_v8 = vld [vmem:[%s3520_s1 + $0x28] sm:$0x1f]  ;;  %p266_p3 = scmp.lt.s32.totalorder %s2030_s26, 63 }
   0xf   : > { %v434_v9 = vmul.f32 %v2397_v5, %v2397_v5  ;;  %v435_v10 = vmul.f32 %v2404_v7, %v2404_v7  ;;  %v436_v11 = vmul.f32 %v2409_v8, %v2409_v8  ;;  %s2040_s21 = sshll.u32 %s2370_s19, 7  ;;  %p290_p4 = scmp.lt.s32.totalorder %s2370_s19, 3 }
  0x10   : > { %v437_v12 = vadd.f32 %v432_v4, %v431_v3  ;;  %s3557_s26 = smov (!%p266_p3, %s2030_s26), 63 }
  0x11   : > { %v444_v13 = vsel %vm443_vm0, %v435_v10, 0.0  ;;  %v445_v14 = vsel %vm443_vm0, %v436_v11, 0.0  ;;  %v440_v15 = vadd.f32 %v434_v9, %v433_v6  ;;  %s2076_s8 = sshll.u32 %s3557_s26, 4  ;;  %s2588_s12 = sshll.u32 %s3557_s26, 3 }
  0x12   : > { %438 = vadd.xlane.f32.xlu0 %v437_v12  ;;  %v446_v16 = vadd.f32 %v445_v14, %v444_v13  ;;  %s2425_s11 = scalar_lea.vmem %s3519_s0, %s2076_s8  ;;  %s2594_s15 = scalar_lea.vmem %s3522_s3, %s2588_s12 }
  0x13   : > { %v2428_v17 = vld [vmem:[%s2425_s11 + $0x20] sm:$0xff]  ;;  %v2431_v18 = vld [vmem:[%s2425_s11 + $0x28] sm:$0xff]  ;;  %v2434_v19 = vld [vmem:[%s2425_s11 + $0x30] sm:$0xff]  ;;  %s2613_s20 = scalar_lea.vmem %s3521_s2, %s2588_s12  ;;  %s3264_s24 = scalar_lea.vmem %s3523_s4, %s2588_s12 }
  0x14   : > { %447 = vadd.xlane.f32.xlu1 %v446_v16  ;;  %v545_v20 = vmul.f32 %v2428_v17, %v2428_v17  ;;  %v546_v21 = vmul.f32 %v2431_v18, %v2431_v18  ;;  %v2441_v22 = vld [vmem:[%s2425_s11 + $0x38] sm:$0xff]  ;;  %v547_v23 = vmul.f32 %v2434_v19, %v2434_v19  ;;  %v2446_v24 = vld [vmem:[%s2425_s11 + $0x50] sm:$0xff]  ;;  %v2458_v29 = vld [vmem:[%s2425_s11 + $0x40] sm:$0xff]  ;;  %s3559_s19 = smov (!%p290_p4, %s2370_s19), 3 }
  0x15   : > { %v2449_v25 = vld [vmem:[%s2425_s11 + $0x58] sm:$0xff]  ;;  %v548_v26 = vmul.f32 %v2441_v22, %v2441_v22  ;;  %v551_v27 = vmul.f32 %v2446_v24, %v2446_v24  ;;  %v2461_v30 = vld [vmem:[%s2425_s11 + $0x48] sm:$0xff]  ;;  %v549_v32 = vmul.f32 %v2458_v29, %v2458_v29  ;;  %v2468_v34 = vld [vmem:[%s2425_s11] sm:$0xff]  ;;  %s2039_s25 = sshll.u32 %s3559_s19, 3 }
  0x16   : > { %441 = vadd.xlane.f32.xlu0 %v440_v15  ;;  %v552_v28 = vmul.f32 %v2449_v25, %v2449_v25  ;;  %v579_v31 = vadd.f32 %v546_v21, %v545_v20  ;;  %v550_v33 = vmul.f32 %v2461_v30, %v2461_v30  ;;  %v2471_v35 = vld [vmem:[%s2425_s11 + $0x8] sm:$0xff]  ;;  %v2474_v37 = vld [vmem:[%s2425_s11 + $0x60] sm:$0xff]  ;;  %v541_v43 = vmul.f32 %v2468_v34, %v2468_v34  ;;  %v2488_v45 = vld [vmem:[%s2425_s11 + $0x70] sm:$0xff]  ;;  %s293_s30 = scalar_lea.vmem %s3524_s5, %s2039_s25 }
  0x17   : > { %v582_v36 = vadd.f32 %v548_v26, %v547_v23  ;;  %v2477_v38 = vld [vmem:[%s2425_s11 + $0x68] sm:$0xff]  ;;  %v553_v40 = vmul.f32 %v2474_v37, %v2474_v37  ;;  %v542_v44 = vmul.f32 %v2471_v35, %v2471_v35  ;;  %v2491_v46 = vld [vmem:[%s2425_s11 + $0x78] sm:$0xff]  ;;  %v2494_v47 = vld [vmem:[%s2425_s11 + $0x10] sm:$0xff]  ;;  %v555_v50 = vmul.f32 %v2488_v45, %v2488_v45 }
  0x18   : > { %580 = vadd.xlane.f32.xlu1 %v579_v31  ;;  %v585_v39 = vadd.f32 %v550_v33, %v549_v32  ;;  %v554_v41 = vmul.f32 %v2477_v38, %v2477_v38  ;;  %v588_v42 = vadd.f32 %v552_v28, %v551_v27  ;;  %v2497_v48 = vld [vmem:[%s2425_s11 + $0x18] sm:$0xff]  ;;  %v556_v51 = vmul.f32 %v2491_v46, %v2491_v46  ;;  %v2508_v55 = vld [vmem:[%s2425_s11 + $0x80] sm:$0xff]  ;;  %v2511_v56 = vld [vmem:[%s2425_s11 + $0x88] sm:$0xff] }
  0x19   : > { %v573_v52 = vadd.f32 %v542_v44, %v541_v43  ;;  %v543_v53 = vmul.f32 %v2494_v47, %v2494_v47  ;;  %v544_v54 = vmul.f32 %v2497_v48, %v2497_v48  ;;  %v2514_v57 = vld [vmem:[%s2425_s11 + $0x90] sm:$0xff]  ;;  %v2517_v58 = vld [vmem:[%s2425_s11 + $0x98] sm:$0xff]  ;;  %v557_v60 = vmul.f32 %v2508_v55, %v2508_v55  ;;  %v2528_v4 = vld [vmem:[%s2425_s11 + $0xa0] sm:$0xff] }
  0x1a   : > { %583 = vadd.xlane.f32.xlu0 %v582_v36  ;;  %v591_v49 = vadd.f32 %v554_v41, %v553_v40  ;;  %v594_v59 = vadd.f32 %v556_v51, %v555_v50  ;;  %v558_v61 = vmul.f32 %v2511_v56, %v2511_v56  ;;  %v559_v63 = vmul.f32 %v2514_v57, %v2514_v57  ;;  %v2531_v6 = vld [vmem:[%s2425_s11 + $0xa8] sm:$0xff]  ;;  %v2534_v9 = vld [vmem:[%s2425_s11 + $0xb0] sm:$0xff]  ;;  %v2537_v10 = vld [vmem:[%s2425_s11 + $0xb8] sm:$0xff] }
  0x1b   : > { %v576_v62 = vadd.f32 %v544_v54, %v543_v53  ;;  %v560_v3 = vmul.f32 %v2517_v58, %v2517_v58  ;;  %v561_v12 = vmul.f32 %v2528_v4, %v2528_v4  ;;  %v562_v13 = vmul.f32 %v2531_v6, %v2531_v6  ;;  %v2548_v20 = vld [vmem:[%s2425_s11 + $0xc0] sm:$0xff]  ;;  %v2551_v21 = vld [vmem:[%s2425_s11 + $0xc8] sm:$0xff]  ;;  %v2554_v23 = vld [vmem:[%s2425_s11 + $0xd0] sm:$0xff] }
  0x1c   : > { %586 = vadd.xlane.f32.xlu1 %v585_v39  ;;  %v597_v11 = vadd.f32 %v558_v61, %v557_v60  ;;  %v563_v15 = vmul.f32 %v2534_v9, %v2534_v9  ;;  %v564_v16 = vmul.f32 %v2537_v10, %v2537_v10  ;;  %v2557_v26 = vld [vmem:[%s2425_s11 + $0xd8] sm:$0xff]  ;;  %v565_v28 = vmul.f32 %v2548_v20, %v2548_v20  ;;  %v2568_v39 = vld [vmem:[%s2425_s11 + $0xe0] sm:$0xff]  ;;  %v2571_v40 = vld [vmem:[%s2425_s11 + $0xe8] sm:$0xff] }
  0x1d   : > { %v600_v14 = vadd.f32 %v560_v3, %v559_v63  ;;  %v603_v27 = vadd.f32 %v562_v13, %v561_v12  ;;  %v566_v31 = vmul.f32 %v2551_v21, %v2551_v21  ;;  %v567_v33 = vmul.f32 %v2554_v23, %v2554_v23  ;;  %v2574_v41 = vld [vmem:[%s2425_s11 + $0xf0] sm:$0xff]  ;;  %v349_v60 = vld [vmem:[%s2594_s15 + $0x8] sm:$0xff]  ;;  %v360_v3 = vld [vmem:[%s2594_s15 + $0x60] sm:$0xff] }
  0x1e   : > { %589 = vadd.xlane.f32.xlu0 %v588_v42  ;;  %v606_v32 = vadd.f32 %v564_v16, %v563_v15  ;;  %v568_v36 = vmul.f32 %v2557_v26, %v2557_v26  ;;  %v2577_v42 = vld [vmem:[%s2425_s11 + $0xf8] sm:$0xff]  ;;  %v569_v44 = vmul.f32 %v2568_v39, %v2568_v39  ;;  %v571_v51 = vmul.f32 %v2574_v41, %v2574_v41  ;;  %v358_v61 = vld [vmem:[%s2594_s15 + $0x50] sm:$0xff]  ;;  %v352_v13 = vld [vmem:[%s2594_s15 + $0x20] sm:$0xff] }
  0x1f   : > { %v609_v43 = vadd.f32 %v566_v31, %v565_v28  ;;  %v350_v63 = vld [vmem:[%s2594_s15 + $0x10] sm:$0xff]  ;;  %v355_v16 = vld [vmem:[%s2594_s15 + $0x38] sm:$0xff]  ;;  %v357_v28 = vld [vmem:[%s2594_s15 + $0x48] sm:$0xff] }
  0x20   : > { %592 = vadd.xlane.f32.xlu1 %v591_v49  ;;  %v570_v49 = vmul.f32 %v2571_v40, %v2571_v40  ;;  %v612_v50 = vadd.f32 %v568_v36, %v567_v33  ;;  %v362_v12 = vld [vmem:[%s2594_s15 + $0x70] sm:$0xff]  ;;  %v359_v31 = vld [vmem:[%s2594_s15 + $0x58] sm:$0xff]  ;;  %v361_v36 = vld [vmem:[%s2594_s15 + $0x68] sm:$0xff] }
  0x21   : > { %v354_v15 = vld [vmem:[%s2594_s15 + $0x30] sm:$0xff] }
  0x22   : > { %574 = vadd.xlane.f32.xlu0 %v573_v52  ;;  %v572_v52 = vmul.f32 %v2577_v42, %v2577_v42  ;;  %v615_v53 = vadd.f32 %v570_v49, %v569_v44 }
  0x24   : > { %595 = vadd.xlane.f32.xlu1 %v594_v59  ;;  %v618_v54 = vadd.f32 %v572_v52, %v571_v51  ;;  %v2332_v59 = vmov 0   ;;  %v363_v51 = vld [vmem:[%s2594_s15 + $0x78] sm:$0xff] }
  0x25   : > { %2157 = vset.pattern.permute.xlu0 %v2332_v59  ;;  %2156 = vset.pattern.permute.xlu1 %v2332_v59 }
  0x26   : > { %577 = vadd.xlane.f32.xlu0 %v576_v62  ;;  %v348_v62 = vld [vmem:[%s2594_s15] sm:$0xff] }
  0x28   : > { %598 = vadd.xlane.f32.xlu1 %v597_v11  ;;  %v351_v11 = vld [vmem:[%s2594_s15 + $0x18] sm:$0xff] }
  0x2a   : > { %601 = vadd.xlane.f32.xlu0 %v600_v14  ;;  %v353_v14 = vld [vmem:[%s2594_s15 + $0x28] sm:$0xff] }
  0x2c   : > { %604 = vadd.xlane.f32.xlu1 %v603_v27  ;;  %v356_v27 = vld [vmem:[%s2594_s15 + $0x40] sm:$0xff] }
  0x2e   : > { %607 = vadd.xlane.f32.xlu0 %v606_v32  ;;  %v2617_v32 = vld [vmem:[%s2613_s20] sm:$0xff] }
  0x2f   : > { %v1525_v33 = vsel %vm944_vm1, %v2617_v32, -inf }
  0x30   : > { %610 = vadd.xlane.f32.xlu1 %v609_v43  ;;  %v2623_v43 = vld [vmem:[%s2613_s20 + $0x8] sm:$0xff] }
  0x32   : > { %613 = vadd.xlane.f32.xlu0 %v612_v50  ;;  %v1528_v50 = vsel %vm944_vm1, %v2623_v43, -inf }
  0x34   : > { %616 = vadd.xlane.f32.xlu1 %v615_v53  ;;  %v2629_v53 = vld [vmem:[%s2613_s20 + $0x10] sm:$0xff] }
  0x36   : > { %619 = vadd.xlane.f32.xlu0 %v618_v54 }
  0x45   : > { %849 = vperm.xlu1 %2156, %v348_v62   ;;  %v2634_v62 = vld [vmem:[%s2613_s20 + $0x18] sm:$0xff] }
  0x49   : > { %855 = vperm.xlu1 %2156, %v350_v63  }
  0x4c   : > { %852 = vperm.xlu0 %2157, %v349_v60  }
  0x4d   : > { %858 = vperm.xlu1 %2156, %v351_v11  }
  0x50   : > { %879 = vperm.xlu0 %2157, %v358_v61   ;;  %v1531_v61 = vsel %vm944_vm1, %v2629_v53, -inf }
  0x51   : > { %861 = vperm.xlu1 %2156, %v352_v13   ;;  %v2639_v13 = vld [vmem:[%s2613_s20 + $0x20] sm:$0xff] }
  0x54   : > { %885 = vperm.xlu0 %2157, %v360_v3  }
  0x55   : > { %864 = vperm.xlu1 %2156, %v353_v14  }
  0x58   : > { %891 = vperm.xlu0 %2157, %v362_v12   ;;  %v1534_v12 = vsel %vm944_vm1, %v2634_v62, -inf }
  0x59   : > { %867 = vperm.xlu1 %2156, %v354_v15  }
  0x5d   : > { %870 = vperm.xlu1 %2156, %v355_v16   ;;  %v1537_v16 = vsel %vm944_vm1, %v2639_v13, -inf }
  0x61   : > { %873 = vperm.xlu1 %2156, %v356_v27  }
  0x65   : > { %876 = vperm.xlu1 %2156, %v357_v28   ;;  %v2645_v28 = vld [vmem:[%s2613_s20 + $0x28] sm:$0xff] }
  0x69   : > { %882 = vperm.xlu1 %2156, %v359_v31  }
  0x6d   : > { %888 = vperm.xlu1 %2156, %v361_v36  }
  0x71   : > { %894 = vperm.xlu1 %2156, %v363_v51  }
  0x77   : > { %1526 = vmax.xlane.f32.xlu0 %v1525_v33 }
  0x7b   : > { %1529 = vmax.xlane.f32.xlu0 %v1528_v50  ;;  %v1540_v50 = vsel %vm944_vm1, %v2645_v28, -inf }
  0x7f   : > { %1532 = vmax.xlane.f32.xlu0 %v1531_v61 }
  0x83   : > { %1535 = vmax.xlane.f32.xlu0 %v1534_v12 }
  0x87   : > { %1538 = vmax.xlane.f32.xlu0 %v1537_v16 }
  0x8b   : > { %1541 = vmax.xlane.f32.xlu0 %v1540_v50 }
  0x9f   : > { %v439_v44 = vpop.xlane.xlu0 %438 }
  0xa0   : > { %v449_v49 = vmax.f32 %v439_v44, 1e-16 }
  0xa1   : > { %v448_v52 = vpop.xlane.xlu1 %447 }
  0xa2   : > { %2158 = vrsqrt.f32 %v449_v49  ;;  %v451_v54 = vmax.f32 %v448_v52, 1e-16 }
  0xa3   : > { %v442_v59 = vpop.xlane.xlu0 %441 }
  0xa4   : > { %v450_v60 = vmax.f32 %v442_v59, 1e-16  ;;  %2160 = vrsqrt.f32 %v451_v54 }
  0xa5   : > { %v581_v63 = vpop.xlane.xlu1 %580 }
  0xa6   : > { %2162 = vrsqrt.f32 %v450_v60  ;;  %v623_v3 = vmax.f32 %v581_v63, 1e-16  ;;  %v2653_v60 = vld [vmem:[%s2613_s20 + $0x30] sm:$0xff] }
  0xa7   : > { %v584_v11 = vpop.xlane.xlu0 %583 }
  0xa8   : > { %2164 = vrsqrt.f32 %v623_v3  ;;  %v624_v31 = vmax.f32 %v584_v11, 1e-16 }
  0xa9   : > { %v587_v33 = vpop.xlane.xlu1 %586 }
  0xaa   : > { %2166 = vrsqrt.f32 %v624_v31 }
  0xab   : > { %v590_v14 = vpop.xlane.xlu0 %589 }
  0xac   : > { %v2159_v15 = vpop.eup %2158  ;;  %v626_v16 = vmax.f32 %v590_v14, 1e-16 }
  0xad   : > { %v456_v27 = vmul.f32 %v2159_v15, %v2382_v1  ;;  %v455_v52 = vmul.f32 %v2159_v15, %v2377_v0  ;;  %v625_v1 = vmax.f32 %v587_v33, 1e-16  ;;  %v593_v59 = vpop.xlane.xlu1 %592  ;;  %v1543_v0 = vsel %vm944_vm1, %v2653_v60, -inf  ;;  %v2660_v15 = vld [vmem:[%s2613_s20 + $0x38] sm:$0xff]  ;;  %v2665_v33 = vld [vmem:[%s2613_s20 + $0x40] sm:$0xff] }
  0xae   : > { %v2161_v36 = vpop.eup %2160  ;;  %1544 = vmax.xlane.f32.xlu0 %v1543_v0  ;;  %v1546_v31 = vsel %vm944_vm1, %v2660_v15, -inf }
  0xaf   : > { %525 = vmatprep.mubr.f32.mxu0 %v456_v27  ;;  %v575_v49 = vpop.xlane.xlu0 %574  ;;  %v460_v11 = vmul.f32 %v2161_v36, %v2409_v8  ;;  %2168 = vrsqrt.f32 %v625_v1  ;;  %v627_v8 = vmax.f32 %v593_v59, 1e-16  ;;  %v1549_v1 = vsel %vm944_vm1, %v2665_v33, -inf }
  0xb0   : > { %v2163_v44 = vpop.eup %2162 }
  0xb1   : > { %v458_v51 = vmul.f32 %v2163_v44, %v2397_v5  ;;  %v457_v54 = vmul.f32 %v2163_v44, %v2387_v2  ;;  %v621_v2 = vmax.f32 %v575_v49, 1e-16  ;;  %v459_v49 = vmul.f32 %v2161_v36, %v2404_v7 }
  0xb2   : > { %v2165_v61 = vpop.eup %2164  ;;  %1547 = vmax.xlane.f32.xlu0 %v1546_v31 }
  0xb3   : > { %v2126_v63 = vpack.c.bf16 %v458_v51, %v456_v27  ;;  %v2128_v3 = vpack.c.bf16 %v457_v54, %v455_v52  ;;  %v658_v12 = vmul.f32 %v2165_v61, %v2431_v18  ;;  %v578_v5 = vpop.xlane.xlu0 %577  ;;  %v596_v27 = vpop.xlane.xlu1 %595  ;;  %2170 = vrsqrt.f32 %v621_v2 }
  0xb4   : > { %v622_v18 = vmax.f32 %v578_v5, 1e-16  ;;  %2172 = vrsqrt.f32 %v626_v16  ;;  %v2167_v44 = vpop.eup %2166  ;;  %v657_v14 = vmul.f32 %v2165_v61, %v2428_v17  ;;  %v628_v50 = vmax.f32 %v596_v27, 1e-16 }
  0xb5   : > { %2127 = vmatprep.subr.bf16.mxu0 %v2126_v63  ;;  %2138 = vmatprep.subr.bf16.mxu1 %v2126_v63  ;;  %2174 = vrsqrt.f32 %v627_v8  ;;  %v660_v0 = vmul.f32 %v2167_v44, %v2441_v22  ;;  %v659_v7 = vmul.f32 %v2167_v44, %v2434_v19 }
  0xb6   : > { %2129 = vmatpush1.bf16.xpose.msra.mxu0 %v2128_v3  ;;  %2140 = vmatpush1.bf16.xpose.msra.mxu1 %v2128_v3  ;;  %2176 = vrsqrt.f32 %v622_v18 }
  0xb7   : > { %465 = vmatprep.subr.mxu0 %v460_v11  ;;  %2139 = vmatprep.subr.mxu1 %v460_v11  ;;  %v599_v59 = vpop.xlane.xlu1 %598  ;;  %2178 = vrsqrt.f32 %v628_v50  ;;  %v602_v61 = vpop.xlane.xlu0 %601 }
  0xb8   : > { %759 = vmatprep.mubr.f32.mxu1 %v658_v12  ;;  %1550 = vmax.xlane.f32.xlu0 %v1549_v1  ;;  %v629_v36 = vmax.f32 %v599_v59, 1e-16 }
  0xb9   : > { %v2169_v12 = vpop.eup %2168 }
  0xba   : > { %v662_v17 = vmul.f32 %v2169_v12, %v2461_v30  ;;  %v661_v22 = vmul.f32 %v2169_v12, %v2458_v29  ;;  %2180 = vrsqrt.f32 %v629_v36 }
  0xbb   : > { %v605_v19 = vpop.xlane.xlu1 %604 }
  0xbd   : > { %v2171_v2 = vpop.eup %2170 }
  0xbe   : > { %466 = vmatpush1.xpose.msra.mxu0 %v459_v49  ;;  %2141 = vmatpush1.xpose.msra.mxu1 %v459_v49  ;;  %v2173_v5 = vpop.eup %2172 }
  0xbf   : > { %2131 = vmatprep.subr.bf16.mxu0 %v2126_v63  ;;  %v2175_v63 = vpop.eup %2174  ;;  %v664_v30 = vmul.f32 %v2173_v5, %v2449_v25  ;;  %v663_v18 = vmul.f32 %v2173_v5, %v2446_v24 }
  0xc0   : > { %v2177_v16 = vpop.eup %2176  ;;  %v666_v8 = vmul.f32 %v2175_v63, %v2477_v38 }
  0xc1   : > { %526 = vmatmul.mubr.f32.vlgmr.msra.gmra.mrb[0].mxu0 %v455_v52  ;;  %760 = vmatmul.mubr.f32.vlgmr.msra.gmra.mrb[0].mxu1 %v657_v14  ;;  %v630_v52 = vmax.f32 %v602_v61, 1e-16  ;;  %v656_v29 = vmul.f32 %v2177_v16, %v2497_v48  ;;  %v2179_v27 = vpop.eup %2178  ;;  %v655_v25 = vmul.f32 %v2177_v16, %v2494_v47  ;;  %v611_v48 = vpop.xlane.xlu1 %610 }
  0xc2   : > { %530 = vmatprep.mubr.f32.mxu0 %v458_v51  ;;  %2133 = vmatpush1.bf16.xpose.msra.mxu0 %v2128_v3  ;;  %v654_v51 = vmul.f32 %v2171_v2, %v2471_v35  ;;  %v653_v3 = vmul.f32 %v2171_v2, %v2468_v34  ;;  %v665_v34 = vmul.f32 %v2175_v63, %v2474_v37  ;;  %v633_v24 = vmax.f32 %v611_v48, 1e-16 }
  0xc3   : > { %689 = vmatprep.subr.mxu0 %v460_v11  ;;  %764 = vmatprep.mubr.f32.mxu1 %v660_v0  ;;  %2182 = vrsqrt.f32 %v630_v52  ;;  %v668_v31 = vmul.f32 %v2179_v27, %v2491_v46  ;;  %v667_v38 = vmul.f32 %v2179_v27, %v2488_v45  ;;  %v3525_v63 = vlaneseq }
  0xc4   : > { %v2181_v44 = vpop.eup %2180 }
  0xc5   : > { %531 = vmatmul.mubr.f32.gmra.mrb[2].mxu0 %v457_v54  ;;  %765 = vmatmul.mubr.f32.gmra.mrb[2].mxu1 %v659_v7  ;;  %v631_v54 = vmax.f32 %v605_v19, 1e-16  ;;  %v669_v37 = vmul.f32 %v2181_v44, %v2508_v55  ;;  %v617_v1 = vpop.xlane.xlu1 %616 }
  0xc6   : > { %535 = vmatprep.mubr.f32.mxu0 %v460_v11  ;;  %769 = vmatprep.mubr.f32.mxu1 %v662_v17  ;;  %v608_v11 = vpop.xlane.xlu0 %607  ;;  %v635_v12 = vmax.f32 %v617_v1, 1e-16 }
  0xc7   : > { %2184 = vrsqrt.f32 %v631_v54  ;;  %v632_v35 = vmax.f32 %v608_v11, 1e-16 }
  0xc9   : > { %536 = vmatmul.mubr.f32.gmra.mrb[4].mxu0 %v459_v49  ;;  %770 = vmatmul.mubr.f32.gmra.mrb[4].mxu1 %v661_v22  ;;  %2186 = vrsqrt.f32 %v632_v35 }
  0xca   : > { %690 = vmatpush1.xpose.msra.mxu0 %v459_v49  ;;  %774 = vmatprep.mubr.f32.mxu1 %v664_v30  ;;  %v670_v49 = vmul.f32 %v2181_v44, %v2511_v56  ;;  %v614_v47 = vpop.xlane.xlu0 %613  ;;  %2188 = vrsqrt.f32 %v633_v24 }
  0xcb   : > { %749 = vmatprep.mubr.f32.mxu0 %v654_v51  ;;  %v634_v50 = vmax.f32 %v614_v47, 1e-16 }
  0xcd   : > { %750 = vmatmul.mubr.f32.vlgmr.msra.gmra.mrb[6].mxu0 %v653_v3  ;;  %775 = vmatmul.mubr.f32.gmra.mrb[6].mxu1 %v663_v18  ;;  %v2183_v14 = vpop.eup %2182  ;;  %2190 = vrsqrt.f32 %v634_v50 }
  0xce   : > { %754 = vmatprep.mubr.f32.mxu0 %v656_v29  ;;  %779 = vmatprep.mubr.f32.mxu1 %v666_v8  ;;  %v672_v46 = vmul.f32 %v2183_v14, %v2517_v58  ;;  %v671_v45 = vmul.f32 %v2183_v14, %v2514_v57  ;;  %v620_v0 = vpop.xlane.xlu0 %619  ;;  %2192 = vrsqrt.f32 %v635_v12 }
  0xcf   : > { %v636_v36 = vmax.f32 %v620_v0, 1e-16 }
  0xd1   : > { %755 = vmatmul.mubr.f32.gmra.mrb[8].mxu0 %v655_v25  ;;  %780 = vmatmul.mubr.f32.gmra.mrb[8].mxu1 %v665_v34  ;;  %v2185_v59 = vpop.eup %2184  ;;  %2194 = vrsqrt.f32 %v636_v36 }
  0xd2   : > { %784 = vmatprep.mubr.f32.mxu1 %v668_v31  ;;  %v674_v56 = vmul.f32 %v2185_v59, %v2531_v6  ;;  %v673_v55 = vmul.f32 %v2185_v59, %v2528_v4 }
  0xd3   : > { %v2187_v7 = vpop.eup %2186 }
  0xd4   : > { %v676_v58 = vmul.f32 %v2187_v7, %v2537_v10  ;;  %v2189_v17 = vpop.eup %2188  ;;  %v675_v61 = vmul.f32 %v2187_v7, %v2534_v9 }
  0xd5   : > { %785 = vmatmul.mubr.f32.gmra.mrb[10].mxu1 %v667_v38  ;;  %v678_v57 = vmul.f32 %v2189_v17, %v2551_v21  ;;  %v677_v6 = vmul.f32 %v2189_v17, %v2548_v20 }
  0xd6   : > { %789 = vmatprep.mubr.f32.mxu1 %v670_v49 }
  0xd7   : > { %v2191_v2 = vpop.eup %2190 }
  0xd8   : > { %v680_v5 = vmul.f32 %v2191_v2, %v2557_v26  ;;  %v2193_v4 = vpop.eup %2192  ;;  %v679_v22 = vmul.f32 %v2191_v2, %v2554_v23  ;;  %v2702_v26 = vand.u32 127, %v3525_v63  ;;  %v850_v23 = vpop.permute.xlu1 %849 }
  0xd9   : > { %790 = vmatmul.mubr.f32.gmra.mrb[12].mxu1 %v669_v37  ;;  %v682_v10 = vmul.f32 %v2193_v4, %v2571_v40  ;;  %v681_v9 = vmul.f32 %v2193_v4, %v2568_v39  ;;  %v2333_v40 = vmov 0.0  }
  0xda   : > { %794 = vmatprep.mubr.f32.mxu1 %v672_v46  ;;  %3537 = vst [vmem:[#allocation2_spill] sm:$0xff] %v2702_v26  ;;  %vm896_vm2 = vcmp.eq.s32.totalorder %v2702_v26, %v850_v23 }
  0xdb   : > { %v2195_v52 = vpop.eup %2194  ;;  %v2706_v19 = vsel %vm896_vm2, 1.0, %v2333_v40 }
  0xdc   : > { %v684_v21 = vmul.f32 %v2195_v52, %v2577_v42  ;;  %v683_v20 = vmul.f32 %v2195_v52, %v2574_v41  ;;  %2102 = vmatprep.mubr.msk.f32.mxu0 %vm944_vm1, %v2706_v19  ;;  %v856_v39 = vpop.permute.xlu1 %855  ;;  %v853_v42 = vpop.permute.xlu0 %852 }
  0xdd   : > { %795 = vmatmul.mubr.f32.gmra.mrb[14].mxu1 %v671_v45  ;;  %vm897_vm3 = vcmp.eq.s32.totalorder %v2702_v26, %v853_v42  ;;  %vm898_vm4 = vcmp.eq.s32.totalorder %v2702_v26, %v856_v39 }
  0xde   : > { %799 = vmatprep.mubr.f32.mxu1 %v674_v56  ;;  %v2742_v56 = vsel %vm897_vm3, 1.0, %v2333_v40  ;;  %v2745_v0 = vsel %vm898_vm4, 1.0, %v2333_v40 }
  0xe0   : > { %v859_v16 = vpop.permute.xlu1 %858  ;;  %v2710_v51 = vpop.permute.xlu0 %879 }
  0xe1   : > { %800 = vmatmul.mubr.f32.gmra.mrb[16].mxu1 %v673_v55  ;;  %vm899_vm5 = vcmp.eq.s32.totalorder %v2702_v26, %v859_v16  ;;  %vm906_vm12 = vcmp.eq.s32.totalorder %v2702_v26, %v2710_v51 }
  0xe2   : > { %804 = vmatprep.mubr.f32.mxu1 %v676_v58 }
  0xe4   : > { %v862_v41 = vpop.permute.xlu1 %861  ;;  %v2712_v30 = vpop.permute.xlu0 %885 }
  0xe5   : > { %805 = vmatmul.mubr.f32.gmra.mrb[18].mxu1 %v675_v61  ;;  %vm900_vm6 = vcmp.eq.s32.totalorder %v2702_v26, %v862_v41  ;;  %vm908_vm14 = vcmp.eq.s32.totalorder %v2702_v26, %v2712_v30 }
  0xe6   : > { %809 = vmatprep.mubr.f32.mxu1 %v678_v57 }
  0xe8   : > { %v2714_v3 = vpop.permute.xlu1 %864  ;;  %v2716_v54 = vpop.permute.xlu0 %891 }
  0xe9   : > { %810 = vmatmul.mubr.f32.gmra.mrb[20].mxu1 %v677_v6  ;;  %v2761_v6 = vsel %vm899_vm5, 1.0, %v2333_v40  ;;  %vm901_vm7 = vcmp.eq.s32.totalorder %v2702_v26, %v2714_v3  ;;  %v2793_v3 = vld [vmem:[%s2613_s20 + $0x50] sm:$0xff]  ;;  %vm1829_vm5 = vcmask 7168  }
  0xea   : > { %814 = vmatprep.mubr.f32.mxu1 %v680_v5  ;;  %v2766_v5 = vld [vmem:[%s2613_s20 + $0x48] sm:$0xff]  ;;  %v2788_v41 = vsel %vm901_vm7, 1.0, %v2333_v40 }
  0xeb   : > { %v1552_v42 = vsel %vm944_vm1, %v2766_v5, -inf }
  0xec   : > { %v2718_v29 = vpop.permute.xlu1 %867 }
  0xed   : > { %815 = vmatmul.mubr.f32.gmra.mrb[22].mxu1 %v679_v22  ;;  %v2769_v22 = vsel %vm900_vm6, 1.0, %v2333_v40  ;;  %vm902_vm8 = vcmp.eq.s32.totalorder %v2702_v26, %v2718_v29 }
  0xee   : > { %819 = vmatprep.mubr.f32.mxu1 %v682_v10  ;;  %v2796_v29 = vsel %vm902_vm8, 1.0, %v2333_v40 }
  0xf0   : > { %v2722_v11 = vpop.permute.xlu1 %870 }
  0xf1   : > { %820 = vmatmul.mubr.f32.gmra.mrb[24].mxu1 %v681_v9  ;;  %vm903_vm9 = vcmp.eq.s32.totalorder %v2702_v26, %v2722_v11 }
  0xf2   : > { %824 = vmatprep.mubr.f32.mxu1 %v684_v21 }
  0xf4   : > { %v2735_v50 = vpop.permute.xlu1 %873 }
  0xf5   : > { %825 = vmatmul.mubr.f32.gmra.mrb[26].mxu1 %v683_v20  ;;  %vm904_vm10 = vcmp.eq.s32.totalorder %v2702_v26, %v2735_v50 }
  0xf8   : > { %v877_v4 = vpop.permute.xlu1 %876 }
  0xf9   : > { %vm905_vm11 = vcmp.eq.s32.totalorder %v2702_v26, %v877_v4 }
 0x104   : > { %v2720_v8 = vpop.xlane.xlu0 %1526 }
 0x108   : > { %v2728_v48 = vpop.xlane.xlu0 %1529 }
 0x109   : > { %v2828_v50 = vsub.f32 %v2623_v43, %v2728_v48  ;;  %v2844_v43 = vld [vmem:[%s2613_s20 + $0x60] sm:$0xff] }
 0x10a   : > { %v1561_v4 = vsel %vm944_vm1, %v2844_v43, -inf }
 0x10c   : > { %v2750_v55 = vpop.xlane.xlu0 %1532 }
 0x194   : > { %v527_v27 = vpop.f32.mrb[0].mxu0  ;;  %v761_v18 = vpop.f32.mrb[0].mxu1 }
 0x195   : > { %v2724_v25 = vmul.f32 10.0, %v761_v18  ;;  %v529_v34 = vpop.f32.mrb[1].mxu0  ;;  %v763_v35 = vpop.f32.mrb[1].mxu1 }
 0x196   : > { %v1536_v18 = vpop.xlane.xlu0 %1535  ;;  %v883_v35 = vpop.permute.xlu1 %882 }
 0x197   : > { %v1243_v31 = vsel %vm944_vm1, %v2724_v25, -inf  ;;  %vm907_vm13 = vcmp.eq.s32.totalorder %v2702_v26, %v883_v35 }
 0x198   : > { %v532_v44 = vpop.f32.mrb[2].mxu0  ;;  %1244 = vmax.xlane.f32.xlu1 %v1243_v31  ;;  %v766_v38 = vpop.f32.mrb[2].mxu1 }
 0x199   : > { %v2134_v24 = vpack.c.bf16 %v532_v44, %v527_v27  ;;  %v2730_v49 = vmul.f32 10.0, %v766_v38  ;;  %v534_v47 = vpop.f32.mrb[3].mxu0  ;;  %v768_v14 = vpop.f32.mrb[3].mxu1  ;;  %v1555_v44 = vsel %vm944_vm1, %v2793_v3, -inf }
 0x19a   : > { %v2818_v47 = vld [vmem:[%s2613_s20 + $0x58] sm:$0xff]  ;;  %v2821_v14 = vsel %vm904_vm10, 1.0, %v2333_v40  ;;  %v1539_v51 = vpop.xlane.xlu0 %1538  ;;  %v889_v48 = vpop.permute.xlu1 %888 }
 0x19b   : > { %2135 = vmatprep.subr.bf16.mxu0 %v2134_v24  ;;  %v1246_v37 = vsel %vm944_vm1, %v2730_v49, -inf  ;;  %vm909_vm15 = vcmp.eq.s32.totalorder %v2702_v26, %v889_v48 }
 0x19c   : > { %v537_v46 = vpop.f32.mrb[4].mxu0  ;;  %1247 = vmax.xlane.f32.xlu1 %v1246_v37  ;;  %v771_v1 = vpop.f32.mrb[4].mxu1  ;;  %2137 = vmatpush3.bf16.msra.mxu0 %v2134_v24  ;;  %v2813_v24 = vsel %vm903_vm9, 1.0, %v2333_v40 }
 0x19d   : > { %v2738_v59 = vmul.f32 10.0, %v771_v1  ;;  %v539_v45 = vpop.f32.mrb[5].mxu0  ;;  %2100 = vmatprep.subr.msk.mxu0 %vm443_vm0, %v537_v46  ;;  %v773_v12 = vpop.f32.mrb[5].mxu1  ;;  %v1558_v1 = vsel %vm944_vm1, %v2818_v47, -inf }
 0x19f   : > { %v1249_v7 = vsel %vm944_vm1, %v2738_v59, -inf }
 0x1a0   : > { %1250 = vmax.xlane.f32.xlu1 %v1249_v7  ;;  %v751_v36 = vpop.f32.mrb[6].mxu0  ;;  %v776_v58 = vpop.f32.mrb[6].mxu1  ;;  %2101 = vmatpush3.msk.msra.mxu0 %vm443_vm0, %v537_v46  ;;  %v2839_v7 = vsel %vm905_vm11, 1.0, %v2333_v40  ;;  %vm910_vm0 = vcmp.eq.s32.totalorder %v2702_v26, %v2716_v54 }
 0x1a1   : > { %v2754_v17 = vmul.f32 10.0, %v751_v36  ;;  %v2756_v61 = vmul.f32 10.0, %v776_v58  ;;  %v778_v57 = vpop.f32.mrb[7].mxu1  ;;  %2103 = vmatmul.mubr.msk.f32.vlgmr.msra.gmra.mrb[10].mxu0 %vm944_vm1, %v2742_v56  ;;  %v753_v2 = vpop.f32.mrb[7].mxu0  ;;  %v2847_v36 = vsel %vm906_vm12, 1.0, %v2333_v40 }
 0x1a2   : > { %2105 = vmatprep.mubr.msk.f32.mxu0 %vm944_vm1, %v2745_v0  ;;  %v1591_v58 = vmul.f32 1.442695, %v2828_v50  ;;  %v2855_v2 = vsub.f32 %v2629_v53, %v2750_v55  ;;  %v2871_v53 = vld [vmem:[%s2613_s20 + $0x68] sm:$0xff]  ;;  %v2874_v55 = vsel %vm908_vm14, 1.0, %v2333_v40 }
 0x1a3   : > { %v1252_v10 = vsel %vm944_vm1, %v2756_v61, -inf  ;;  %v1237_v52 = vsel %vm944_vm1, %v2754_v17, -inf }
 0x1a4   : > { %1253 = vmax.xlane.f32.xlu1 %v1252_v10  ;;  %1238 = vmax.xlane.f32.xlu0 %v1237_v52  ;;  %v756_v9 = vpop.f32.mrb[8].mxu0  ;;  %v781_v21 = vpop.f32.mrb[8].mxu1  ;;  %2196 = vpow2.f32 %v1591_v58 }
 0x1a5   : > { %v2779_v20 = vmul.f32 10.0, %v756_v9  ;;  %2106 = vmatmul.mubr.msk.f32.gmra.mrb[12].mxu0 %vm944_vm1, %v2761_v6  ;;  %v758_v23 = vpop.f32.mrb[9].mxu0  ;;  %v2783_v39 = vmul.f32 10.0, %v781_v21  ;;  %v783_v16 = vpop.f32.mrb[9].mxu1  ;;  %v2866_v9 = vsel %vm907_vm13, 1.0, %v2333_v40 }
 0x1a6   : > { %2108 = vmatprep.mubr.msk.f32.mxu0 %vm944_vm1, %v2769_v22  ;;  %v1542_v21 = vpop.xlane.xlu0 %1541  ;;  %v1593_v23 = vmul.f32 1.442695, %v2855_v2  ;;  %v895_v16 = vpop.permute.xlu1 %894 }
 0x1a7   : > { %v1240_v27 = vsel %vm944_vm1, %v2779_v20, -inf  ;;  %v1255_v11 = vsel %vm944_vm1, %v2783_v39, -inf  ;;  %vm911_vm2 = vcmp.eq.s32.totalorder %v2702_v26, %v895_v16 }
 0x1a8   : > { %1553 = vmax.xlane.f32.xlu0 %v1552_v42  ;;  %1241 = vmax.xlane.f32.xlu1 %v1240_v27  ;;  %v786_v34 = vpop.f32.mrb[10].mxu1  ;;  %v2881_v27 = vsub.f32 %v2634_v62, %v1536_v18  ;;  %v2897_v62 = vld [vmem:[%s2613_s20 + $0x70] sm:$0xff]  ;;  %v2903_v18 = vsel %vm910_vm0, 1.0, %v2333_v40  ;;  %2198 = vpow2.f32 %v1593_v23  ;;  %v2932_v23 = vsub.f32 %v2645_v28, %v1542_v21 }
 0x1a9   : > { %2109 = vmatmul.mubr.msk.f32.gmra.mrb[14].mxu0 %vm944_vm1, %v2788_v41  ;;  %v2806_v31 = vmul.f32 10.0, %v786_v34  ;;  %v788_v38 = vpop.f32.mrb[11].mxu1  ;;  %v1564_v34 = vsel %vm944_vm1, %v2871_v53, -inf  ;;  %v1567_v54 = vsel %vm944_vm1, %v2897_v62, -inf }
 0x1aa   : > { %2111 = vmatprep.mubr.msk.f32.mxu0 %vm944_vm1, %v2796_v29  ;;  %v2892_v38 = vsel %vm909_vm15, 1.0, %v2333_v40  ;;  %v1599_v28 = vmul.f32 1.442695, %v2932_v23 }
 0x1ab   : > { %v1258_v45 = vsel %vm944_vm1, %v2806_v31, -inf }
 0x1ac   : > { %1556 = vmax.xlane.f32.xlu0 %v1555_v44  ;;  %1256 = vmax.xlane.f32.xlu1 %v1255_v11  ;;  %v791_v37 = vpop.f32.mrb[12].mxu1 }
 0x1ad   : > { %2112 = vmatmul.mubr.msk.f32.gmra.mrb[16].mxu0 %vm944_vm1, %v2813_v24  ;;  %v2832_v46 = vmul.f32 10.0, %v791_v37  ;;  %v793_v12 = vpop.f32.mrb[13].mxu1  ;;  %v1595_v37 = vmul.f32 1.442695, %v2881_v27 }
 0x1ae   : > { %2114 = vmatprep.mubr.msk.f32.mxu0 %vm944_vm1, %v2821_v14  ;;  %v2197_v16 = vpop.eup %2196 }
 0x1af   : > { %v1261_v10 = vsel %vm944_vm1, %v2832_v46, -inf  ;;  %2200 = vpow2.f32 %v1595_v37 }
 0x1b0   : > { %1559 = vmax.xlane.f32.xlu0 %v1558_v1  ;;  %1259 = vmax.xlane.f32.xlu1 %v1258_v45  ;;  %v796_v57 = vpop.f32.mrb[14].mxu1  ;;  %v2908_v45 = vsub.f32 %v2639_v13, %v1539_v51  ;;  %v2924_v13 = vld [vmem:[%s2613_s20 + $0x78] sm:$0xff]  ;;  %v2928_v51 = vsub.f32 %v2617_v32, %v2720_v8 }
 0x1b1   : > { %2115 = vmatmul.mubr.msk.f32.gmra.mrb[18].mxu0 %vm944_vm1, %v2839_v7  ;;  %v2863_v52 = vmul.f32 10.0, %v796_v57  ;;  %v798_v30 = vpop.f32.mrb[15].mxu1  ;;  %v1545_v57 = vpop.xlane.xlu0 %1544 }
 0x1b2   : > { %2117 = vmatprep.mubr.msk.f32.mxu0 %vm944_vm1, %v2847_v36 }
 0x1b3   : > { %v1264_v35 = vsel %vm944_vm1, %v2863_v52, -inf }
 0x1b4   : > { %1562 = vmax.xlane.f32.xlu0 %v1561_v4  ;;  %1262 = vmax.xlane.f32.xlu1 %v1261_v10  ;;  %v801_v42 = vpop.f32.mrb[16].mxu1  ;;  %v2919_v4 = vsel %vm911_vm2, 1.0, %v2333_v40  ;;  %v1597_v10 = vmul.f32 1.442695, %v2908_v45  ;;  %v1570_v40 = vsel %vm944_vm1, %v2924_v13, -inf }
 0x1b5   : > { %2118 = vmatmul.mubr.msk.f32.gmra.mrb[20].mxu0 %vm944_vm1, %v2866_v9  ;;  %v2889_v44 = vmul.f32 10.0, %v801_v42  ;;  %v803_v11 = vpop.f32.mrb[17].mxu1  ;;  %3538 = vst [vmem:[#allocation3_spill] sm:$0xff] %v2919_v4 }
 0x1b6   : > { %2120 = vmatprep.mubr.msk.f32.mxu0 %vm944_vm1, %v2874_v55  ;;  %2202 = vpow2.f32 %v1597_v10  ;;  %v2945_v11 = vsub.f32 %v2653_v60, %v1545_v57 }
 0x1b7   : > { %v1267_v12 = vsel %vm944_vm1, %v2889_v44, -inf }
 0x1b8   : > { %1565 = vmax.xlane.f32.xlu0 %v1564_v34  ;;  %1265 = vmax.xlane.f32.xlu1 %v1264_v35  ;;  %v806_v1 = vpop.f32.mrb[18].mxu1  ;;  %v1589_v34 = vmul.f32 1.442695, %v2928_v51  ;;  %v1548_v35 = vpop.xlane.xlu0 %1547  ;;  %v1601_v10 = vmul.f32 1.442695, %v2945_v11 }
 0x1b9   : > { %2121 = vmatmul.mubr.msk.f32.gmra.mrb[22].mxu0 %vm944_vm1, %v2892_v38  ;;  %v2916_v48 = vmul.f32 10.0, %v806_v1  ;;  %v808_v58 = vpop.f32.mrb[19].mxu1 }
 0x1ba   : > { %2123 = vmatprep.mubr.msk.f32.mxu0 %vm944_vm1, %v2903_v18  ;;  %v2199_v58 = vpop.eup %2198  ;;  %2204 = vpow2.f32 %v1589_v34 }
 0x1bb   : > { %v1270_v42 = vsel %vm944_vm1, %v2916_v48, -inf  ;;  %2206 = vpow2.f32 %v1599_v28 }
 0x1bc   : > { %1568 = vmax.xlane.f32.xlu0 %v1567_v54  ;;  %1268 = vmax.xlane.f32.xlu1 %v1267_v12  ;;  %v811_v30 = vpop.f32.mrb[20].mxu1  ;;  %v1624_v54 = vsel %vm944_vm1, %v2197_v16, 0.0  ;;  %v1551_v16 = vpop.xlane.xlu0 %1550  ;;  %2208 = vpow2.f32 %v1601_v10 }
 0x1bd   : > { %2124 = vmatmul.mubr.msk.f32.gmra.mrb[24].mxu0 %vm944_vm1, %v2919_v4  ;;  %v2940_v32 = vmul.f32 10.0, %v811_v30  ;;  %v813_v8 = vpop.f32.mrb[21].mxu1 }
 0x1bf   : > { %v1273_v37 = vsel %vm944_vm1, %v2940_v32, -inf }
 0x1c0   : > { %1571 = vmax.xlane.f32.xlu0 %v1570_v40  ;;  %1271 = vmax.xlane.f32.xlu1 %v1270_v42  ;;  %v816_v21 = vpop.f32.mrb[22].mxu1  ;;  %v2954_v40 = vsub.f32 %v2660_v15, %v1548_v35  ;;  %v1627_v42 = vsel %vm944_vm1, %v2199_v58, 0.0 }
 0x1c1   : > { %v2949_v1 = vmul.f32 10.0, %v816_v21  ;;  %v818_v12 = vpop.f32.mrb[23].mxu1  ;;  %v2201_v21 = vpop.eup %2200 }
 0x1c2   : > { %v1603_v34 = vmul.f32 1.442695, %v2954_v40  ;;  %v2203_v58 = vpop.eup %2202 }
 0x1c3   : > { %v1276_v60 = vsel %vm944_vm1, %v2949_v1, -inf }
 0x1c4   : > { %1274 = vmax.xlane.f32.xlu1 %v1273_v37  ;;  %1625 = vadd.xlane.f32.xlu0 %v1624_v54  ;;  %v821_v30 = vpop.f32.mrb[24].mxu1  ;;  %v2963_v37 = vsub.f32 %v2665_v33, %v1551_v16  ;;  %v1630_v54 = vsel %vm944_vm1, %v2201_v21, 0.0  ;;  %2210 = vpow2.f32 %v1603_v34  ;;  %v1633_v33 = vsel %vm944_vm1, %v2203_v58, 0.0 }
 0x1c5   : > { %v2958_v57 = vmul.f32 10.0, %v821_v30  ;;  %v823_v8 = vpop.f32.mrb[25].mxu1  ;;  %v2205_v30 = vpop.eup %2204 }
 0x1c6   : > { %v1605_v10 = vmul.f32 1.442695, %v2963_v37  ;;  %v1621_v8 = vsel %vm944_vm1, %v2205_v30, 0.0 }
 0x1c7   : > { %v1279_v15 = vsel %vm944_vm1, %v2958_v57, -inf }
 0x1c8   : > { %1277 = vmax.xlane.f32.xlu1 %v1276_v60  ;;  %1628 = vadd.xlane.f32.xlu0 %v1627_v42  ;;  %v826_v28 = vpop.f32.mrb[26].mxu1  ;;  %v2207_v42 = vpop.eup %2206  ;;  %2212 = vpow2.f32 %v1605_v10 }
 0x1c9   : > { %v2967_v35 = vmul.f32 10.0, %v826_v28  ;;  %v828_v12 = vpop.f32.mrb[27].mxu1  ;;  %v1636_v16 = vsel %vm944_vm1, %v2207_v42, 0.0  ;;  %v2209_v21 = vpop.eup %2208 }
 0x1ca   : > { %v1639_v34 = vsel %vm944_vm1, %v2209_v21, 0.0 }
 0x1cb   : > { %v1282_v60 = vsel %vm944_vm1, %v2967_v35, -inf }
 0x1cc   : > { %1280 = vmax.xlane.f32.xlu1 %v1279_v15  ;;  %1631 = vadd.xlane.f32.xlu0 %v1630_v54 }
 0x1ce   : > { %v2211_v28 = vpop.eup %2210 }
 0x1cf   : > { %v1642_v15 = vsel %vm944_vm1, %v2211_v28, 0.0 }
 0x1d0   : > { %1283 = vmax.xlane.f32.xlu1 %v1282_v60  ;;  %1634 = vadd.xlane.f32.xlu0 %v1633_v33 }
 0x1d2   : > { %v2213_v54 = vpop.eup %2212 }
 0x1d3   : > { %v1645_v12 = vsel %vm944_vm1, %v2213_v54, 0.0 }
 0x1d4   : > { %1622 = vadd.xlane.f32.xlu1 %v1621_v8  ;;  %1637 = vadd.xlane.f32.xlu0 %v1636_v16 }
 0x1d8   : > { %1640 = vadd.xlane.f32.xlu0 %v1639_v34 }
 0x1dc   : > { %1643 = vadd.xlane.f32.xlu0 %v1642_v15 }
 0x1e0   : > { %1646 = vadd.xlane.f32.xlu0 %v1645_v12 }
 0x225   : > { %v1245_v58 = vpop.xlane.xlu1 %1244 }
 0x226   : > { %v2980_v10 = vsub.f32 %v2724_v25, %v1245_v58 }
 0x228   : > { %v1305_v30 = vmul.f32 1.442695, %v2980_v10 }
 0x229   : > { %v1248_v60 = vpop.xlane.xlu1 %1247 }
 0x22a   : > { %2214 = vpow2.f32 %v1305_v30  ;;  %v2984_v33 = vsub.f32 %v2730_v49, %v1248_v60 }
 0x22c   : > { %v1307_v42 = vmul.f32 1.442695, %v2984_v33 }
 0x22d   : > { %v1251_v8 = vpop.xlane.xlu1 %1250 }
 0x22e   : > { %2216 = vpow2.f32 %v1307_v42  ;;  %v2988_v16 = vsub.f32 %v2738_v59, %v1251_v8 }
 0x230   : > { %v1309_v21 = vmul.f32 1.442695, %v2988_v16 }
 0x231   : > { %v1254_v34 = vpop.xlane.xlu1 %1253  ;;  %v1239_v28 = vpop.xlane.xlu0 %1238 }
 0x232   : > { %2218 = vpow2.f32 %v1309_v21  ;;  %v2992_v25 = vsub.f32 %v2756_v61, %v1254_v34  ;;  %v2995_v15 = vsub.f32 %v2754_v17, %v1239_v28 }
 0x234   : > { %v2215_v49 = vpop.eup %2214  ;;  %v1301_v54 = vmul.f32 1.442695, %v2995_v15  ;;  %v1311_v12 = vmul.f32 1.442695, %v2992_v25 }
 0x235   : > { %v1242_v58 = vpop.xlane.xlu1 %1241  ;;  %v1554_v30 = vpop.xlane.xlu0 %1553  ;;  %v1339_v59 = vsel %vm944_vm1, %v2215_v49, 0.0 }
 0x236   : > { %v3001_v60 = vsub.f32 %v2779_v20, %v1242_v58  ;;  %v3004_v42 = vsub.f32 %v2766_v5, %v1554_v30  ;;  %1340 = vadd.xlane.f32.xlu1 %v1339_v59  ;;  %2220 = vpow2.f32 %v1301_v54 }
 0x237   : > { %2222 = vpow2.f32 %v1311_v12 }
 0x238   : > { %v2217_v61 = vpop.eup %2216  ;;  %v1303_v17 = vmul.f32 1.442695, %v3001_v60  ;;  %v1607_v8 = vmul.f32 1.442695, %v3004_v42 }
 0x239   : > { %v1257_v21 = vpop.xlane.xlu1 %1256  ;;  %v1557_v34 = vpop.xlane.xlu0 %1556  ;;  %v1342_v28 = vsel %vm944_vm1, %v2217_v61, 0.0 }
 0x23a   : > { %2224 = vpow2.f32 %v1303_v17  ;;  %v3010_v49 = vsub.f32 %v2783_v39, %v1257_v21  ;;  %v3013_v20 = vsub.f32 %v2793_v3, %v1557_v34  ;;  %1343 = vadd.xlane.f32.xlu1 %v1342_v28 }
 0x23b   : > { %2226 = vpow2.f32 %v1607_v8 }
 0x23c   : > { %v2219_v5 = vpop.eup %2218  ;;  %v1313_v54 = vmul.f32 1.442695, %v3010_v49  ;;  %v1609_v58 = vmul.f32 1.442695, %v3013_v20 }
 0x23d   : > { %v1260_v30 = vpop.xlane.xlu1 %1259  ;;  %v1560_v12 = vpop.xlane.xlu0 %1559  ;;  %v1345_v59 = vsel %vm944_vm1, %v2219_v5, 0.0 }
 0x23e   : > { %2228 = vpow2.f32 %v1313_v54  ;;  %v3019_v61 = vsub.f32 %v2806_v31, %v1260_v30  ;;  %v3022_v39 = vsub.f32 %v2818_v47, %v1560_v12  ;;  %1346 = vadd.xlane.f32.xlu1 %v1345_v59 }
 0x23f   : > { %2230 = vpow2.f32 %v1609_v58 }
 0x240   : > { %v1315_v3 = vmul.f32 1.442695, %v3019_v61  ;;  %v1611_v17 = vmul.f32 1.442695, %v3022_v39  ;;  %v2221_v8 = vpop.eup %2220 }
 0x241   : > { %v1263_v21 = vpop.xlane.xlu1 %1262  ;;  %v1563_v34 = vpop.xlane.xlu0 %1562  ;;  %v1333_v31 = vsel %vm944_vm1, %v2221_v8, 0.0 }
 0x242   : > { %2232 = vpow2.f32 %v1315_v3  ;;  %v3027_v28 = vsub.f32 %v2832_v46, %v1263_v21  ;;  %v3030_v5 = vsub.f32 %v2844_v43, %v1563_v34  ;;  %v2223_v47 = vpop.eup %2222  ;;  %1334 = vadd.xlane.f32.xlu1 %v1333_v31 }
 0x243   : > { %2234 = vpow2.f32 %v1611_v17  ;;  %v1348_v17 = vsel %vm944_vm1, %v2223_v47, 0.0 }
 0x244   : > { %v2225_v54 = vpop.eup %2224  ;;  %v1317_v58 = vmul.f32 1.442695, %v3027_v28  ;;  %v1613_v30 = vmul.f32 1.442695, %v3030_v5 }
 0x245   : > { %v2227_v12 = vpop.eup %2226  ;;  %v1266_v59 = vpop.xlane.xlu1 %1265  ;;  %v1336_v3 = vsel %vm944_vm1, %v2225_v54, 0.0 }
 0x246   : > { %v1566_v63 = vpop.xlane.xlu0 %1565  ;;  %2236 = vpow2.f32 %v1317_v58  ;;  %v3037_v46 = vsub.f32 %v2863_v52, %v1266_v59  ;;  %1337 = vadd.xlane.f32.xlu0 %v1336_v3  ;;  %1349 = vadd.xlane.f32.xlu1 %v1348_v17  ;;  %v1648_v8 = vsel %vm944_vm1, %v2227_v12, 0.0 }
 0x247   : > { %v3040_v43 = vsub.f32 %v2871_v53, %v1566_v63  ;;  %2238 = vpow2.f32 %v1613_v30 }
 0x248   : > { %v2229_v21 = vpop.eup %2228  ;;  %v1319_v34 = vmul.f32 1.442695, %v3037_v46 }
 0x249   : > { %v1615_v31 = vmul.f32 1.442695, %v3040_v43  ;;  %v2231_v54 = vpop.eup %2230  ;;  %v1269_v58 = vpop.xlane.xlu1 %1268  ;;  %v1351_v52 = vsel %vm944_vm1, %v2229_v21, 0.0 }
 0x24a   : > { %v1569_v26 = vpop.xlane.xlu0 %1568  ;;  %2240 = vpow2.f32 %v1319_v34  ;;  %v3048_v63 = vsub.f32 %v2889_v44, %v1269_v58  ;;  %1649 = vadd.xlane.f32.xlu0 %v1648_v8  ;;  %1352 = vadd.xlane.f32.xlu1 %v1351_v52  ;;  %v1651_v47 = vsel %vm944_vm1, %v2231_v54, 0.0 }
 0x24b   : > { %v3051_v53 = vsub.f32 %v2897_v62, %v1569_v26  ;;  %2242 = vpow2.f32 %v1615_v31 }
 0x24c   : > { %v2233_v30 = vpop.eup %2232  ;;  %v1321_v12 = vmul.f32 1.442695, %v3048_v63 }
 0x24d   : > { %3539 = vst [vmem:[#allocation4_spill] sm:$0xff] %v3051_v53  ;;  %v1617_v59 = vmul.f32 1.442695, %v3051_v53  ;;  %v2235_v3 = vpop.eup %2234  ;;  %v1272_v17 = vpop.xlane.xlu1 %1271  ;;  %v1354_v34 = vsel %vm944_vm1, %v2233_v30, 0.0 }
 0x24e   : > { %v1572_v21 = vpop.xlane.xlu0 %1571  ;;  %2244 = vpow2.f32 %v1321_v12  ;;  %v3058_v44 = vsub.f32 %v2916_v48, %v1272_v17  ;;  %1652 = vadd.xlane.f32.xlu0 %v1651_v47  ;;  %1355 = vadd.xlane.f32.xlu1 %v1354_v34  ;;  %v1654_v62 = vsel %vm944_vm1, %v2235_v3, 0.0 }
 0x24f   : > { %v3061_v26 = vsub.f32 %v2924_v13, %v1572_v21  ;;  %2246 = vpow2.f32 %v1617_v59 }
 0x250   : > { %3540 = vst [vmem:[#allocation5_spill] sm:$0xff] %v3058_v44  ;;  %v2237_v8 = vpop.eup %2236  ;;  %v1323_v31 = vmul.f32 1.442695, %v3058_v44 }
 0x251   : > { %3541 = vst [vmem:[#allocation6_spill] sm:$0xff] %v3061_v26  ;;  %v1619_v54 = vmul.f32 1.442695, %v3061_v26  ;;  %v2239_v58 = vpop.eup %2238  ;;  %v1275_v52 = vpop.xlane.xlu1 %1274  ;;  %v1357_v30 = vsel %vm944_vm1, %v2237_v8, 0.0 }
 0x252   : > { %2248 = vpow2.f32 %v1323_v31  ;;  %v3068_v48 = vsub.f32 %v2940_v32, %v1275_v52  ;;  %v1626_v13 = vpop.xlane.xlu0 %1625  ;;  %1655 = vadd.xlane.f32.xlu0 %v1654_v62  ;;  %1358 = vadd.xlane.f32.xlu1 %v1357_v30  ;;  %v1657_v47 = vsel %vm944_vm1, %v2239_v58, 0.0 }
 0x253   : > { %2250 = vpow2.f32 %v1619_v54 }
 0x254   : > { %3542 = vst [vmem:[#allocation7_spill] sm:$0xff] %v3068_v48  ;;  %v2241_v12 = vpop.eup %2240  ;;  %v1325_v59 = vmul.f32 1.442695, %v3068_v48 }
 0x255   : > { %v2243_v3 = vpop.eup %2242  ;;  %v1278_v17 = vpop.xlane.xlu1 %1277  ;;  %v1360_v21 = vsel %vm944_vm1, %v2241_v12, 0.0 }
 0x256   : > { %2252 = vpow2.f32 %v1325_v59  ;;  %v3074_v34 = vsub.f32 %v2949_v1, %v1278_v17  ;;  %1658 = vadd.xlane.f32.xlu0 %v1657_v47  ;;  %1361 = vadd.xlane.f32.xlu1 %v1360_v21  ;;  %v1660_v32 = vsel %vm944_vm1, %v2243_v3, 0.0  ;;  %v1629_v31 = vpop.xlane.xlu0 %1628 }
 0x258   : > { %3543 = vst [vmem:[#allocation8_spill] sm:$0xff] %v3074_v34  ;;  %v2245_v62 = vpop.eup %2244  ;;  %v1327_v8 = vmul.f32 1.442695, %v3074_v34 }
 0x259   : > { %v2247_v54 = vpop.eup %2246  ;;  %v1281_v58 = vpop.xlane.xlu1 %1280  ;;  %v1363_v52 = vsel %vm944_vm1, %v2245_v62, 0.0 }
 0x25a   : > { %2254 = vpow2.f32 %v1327_v8  ;;  %v3080_v30 = vsub.f32 %v2958_v57, %v1281_v58  ;;  %1661 = vadd.xlane.f32.xlu0 %v1660_v32  ;;  %1364 = vadd.xlane.f32.xlu1 %v1363_v52  ;;  %v1663_v1 = vsel %vm944_vm1, %v2247_v54, 0.0  ;;  %v1632_v21 = vpop.xlane.xlu0 %1631 }
 0x25c   : > { %3544 = vst [vmem:[#allocation9_spill] sm:$0xff] %v3080_v30  ;;  %v2249_v47 = vpop.eup %2248  ;;  %v1329_v12 = vmul.f32 1.442695, %v3080_v30 }
 0x25d   : > { %v2251_v59 = vpop.eup %2250  ;;  %v1284_v3 = vpop.xlane.xlu1 %1283  ;;  %v1366_v17 = vsel %vm944_vm1, %v2249_v47, 0.0 }
 0x25e   : > { %2256 = vpow2.f32 %v1329_v12  ;;  %v3086_v34 = vsub.f32 %v2967_v35, %v1284_v3  ;;  %1664 = vadd.xlane.f32.xlu0 %v1663_v1  ;;  %1367 = vadd.xlane.f32.xlu1 %v1366_v17  ;;  %v1666_v57 = vsel %vm944_vm1, %v2251_v59, 0.0  ;;  %v1635_v58 = vpop.xlane.xlu0 %1634 }
 0x260   : > { %3545 = vst [vmem:[#allocation10_spill] sm:$0xff] %v3086_v34  ;;  %v2253_v32 = vpop.eup %2252  ;;  %v1331_v62 = vmul.f32 1.442695, %v3086_v34 }
 0x261   : > { %v1369_v8 = vsel %vm944_vm1, %v2253_v32, 0.0  ;;  %v1623_v47 = vpop.xlane.xlu1 %1622 }
 0x262   : > { %2258 = vpow2.f32 %v1331_v62  ;;  %1667 = vadd.xlane.f32.xlu0 %v1666_v57  ;;  %1370 = vadd.xlane.f32.xlu1 %v1369_v8  ;;  %v1638_v12 = vpop.xlane.xlu0 %1637 }
 0x263   : > { %2260 = vlog2.f32 %v1626_v13 }
 0x264   : > { %v2255_v54 = vpop.eup %2254  ;;  %2262 = vlog2.f32 %v1623_v47 }
 0x265   : > { %v1372_v52 = vsel %vm944_vm1, %v2255_v54, 0.0  ;;  %2264 = vlog2.f32 %v1632_v21  ;;  %v1190_v54 = vmul.f32 0.7, %v2742_v56 }
 0x266   : > { %1373 = vadd.xlane.f32.xlu1 %v1372_v52  ;;  %2266 = vlog2.f32 %v1629_v31  ;;  %v1641_v17 = vpop.xlane.xlu0 %1640 }
 0x267   : > { %2268 = vlog2.f32 %v1638_v12  ;;  %v1189_v12 = vmul.f32 0.7, %v2706_v19 }
 0x268   : > { %v2257_v35 = vpop.eup %2256  ;;  %2270 = vlog2.f32 %v1635_v58  ;;  %v1192_v58 = vmul.f32 0.7, %v2761_v6 }
 0x269   : > { %v1375_v1 = vsel %vm944_vm1, %v2257_v35, 0.0 }
 0x26a   : > { %1376 = vadd.xlane.f32.xlu1 %v1375_v1  ;;  %v1644_v47 = vpop.xlane.xlu0 %1643  ;;  %v1141_v1 = vmul.f32 0.9, %v2706_v19 }
 0x26b   : > { %2272 = vlog2.f32 %v1644_v47 }
 0x26c   : > { %v2259_v59 = vpop.eup %2258  ;;  %2274 = vlog2.f32 %v1641_v17 }
 0x26d   : > { %v1378_v3 = vsel %vm944_vm1, %v2259_v59, 0.0  ;;  %v2261_v57 = vpop.eup %2260 }
 0x26e   : > { %1379 = vadd.xlane.f32.xlu1 %v1378_v3  ;;  %v2263_v32 = vpop.eup %2262  ;;  %v1672_v8 = vmul.f32 0.6931472, %v2261_v57 }
 0x26f   : > { %v2265_v62 = vpop.eup %2264  ;;  %v1670_v52 = vmul.f32 0.6931472, %v2263_v32 }
 0x270   : > { %v2267_v31 = vpop.eup %2266  ;;  %v1676_v59 = vmul.f32 0.6931472, %v2265_v62  ;;  %v1702_v48 = vsub.f32 %v2828_v50, %v1672_v8  ;;  %v1191_v50 = vmul.f32 0.7, %v2745_v0 }
 0x271   : > { %v1674_v4 = vmul.f32 0.6931472, %v2267_v31  ;;  %v1701_v44 = vsub.f32 %v2928_v51, %v1670_v52  ;;  %v2269_v19 = vpop.eup %2268  ;;  %v1194_v31 = vmul.f32 0.7, %v2788_v41 }
 0x272   : > { %v1704_v53 = vsub.f32 %v2881_v27, %v1676_v59  ;;  %v1680_v52 = vmul.f32 0.6931472, %v2269_v19  ;;  %v1647_v59 = vpop.xlane.xlu0 %1646 }
 0x273   : > { %v1703_v27 = vsub.f32 %v2855_v2, %v1674_v4  ;;  %2276 = vlog2.f32 %v1647_v59  ;;  %v1193_v2 = vmul.f32 0.7, %v2769_v22 }
 0x274   : > { %v3094_v13 = vpop.f32.mrb[10].mxu0  ;;  %v1706_v19 = vsub.f32 %v2932_v23, %v1680_v52 }
 0x275   : > { %v1206_v21 = vmul.f32 0.3, %v3094_v13  ;;  %v1062_v35 = vpop.f32.mrb[11].mxu0 }
 0x276   : > { %v1157_v34 = vmul.f32 0.1, %v1062_v35  ;;  %v1205_v30 = vmul.f32 0.3, %v1062_v35 }
 0x277   : > { %v1222_v3 = vadd.f32 %v1206_v21, %v1190_v54 }
 0x278   : > { %v3100_v57 = vpop.f32.mrb[12].mxu0  ;;  %v3104_v26 = vadd.f32 %v1157_v34, %v1141_v1  ;;  %v1221_v62 = vadd.f32 %v1205_v30, %v1189_v12 }
 0x279   : > { %v1208_v32 = vmul.f32 0.3, %v3100_v57  ;;  %v3108_v54 = vpop.f32.mrb[13].mxu0  ;;  %v1718_v21 = vmul.f32 %v1702_v48, %v1222_v3 }
 0x27a   : > { %v1207_v8 = vmul.f32 0.3, %v3108_v54  ;;  %v1717_v1 = vmul.f32 %v1701_v44, %v1221_v62 }
 0x27b   : > { %v1224_v35 = vadd.f32 %v1208_v32, %v1192_v58  ;;  %v1736_v34 = vsel %vm944_vm1, %v1718_v21, 0.0  ;;  %v2271_v58 = vpop.eup %2270 }
 0x27c   : > { %v3113_v47 = vpop.f32.mrb[14].mxu0  ;;  %1737 = vadd.xlane.f32.xlu0 %v1736_v34  ;;  %v1223_v3 = vadd.f32 %v1207_v8, %v1191_v50  ;;  %v1733_v12 = vsel %vm944_vm1, %v1717_v1, 0.0  ;;  %v1678_v4 = vmul.f32 0.6931472, %v2271_v58 }
 0x27d   : > { %v1210_v51 = vmul.f32 0.3, %v3113_v47  ;;  %v3118_v48 = vpop.f32.mrb[15].mxu0  ;;  %v1720_v30 = vmul.f32 %v1704_v53, %v1224_v35  ;;  %1734 = vadd.xlane.f32.xlu1 %v1733_v12  ;;  %v2273_v35 = vpop.eup %2272 }
 0x27e   : > { %v1209_v17 = vmul.f32 0.3, %v3118_v48  ;;  %v1719_v21 = vmul.f32 %v1703_v27, %v1223_v3  ;;  %v1705_v27 = vsub.f32 %v2908_v45, %v1678_v4  ;;  %v1684_v59 = vmul.f32 0.6931472, %v2273_v35  ;;  %v2275_v3 = vpop.eup %2274 }
 0x27f   : > { %v1742_v44 = vsel %vm944_vm1, %v1720_v30, 0.0  ;;  %v1226_v32 = vadd.f32 %v1210_v51, %v1194_v31  ;;  %v1196_v30 = vmul.f32 0.7, %v2813_v24 }
 0x280   : > { %v3124_v62 = vpop.f32.mrb[16].mxu0  ;;  %1743 = vadd.xlane.f32.xlu0 %v1742_v44  ;;  %v1225_v50 = vadd.f32 %v1209_v17, %v1193_v2  ;;  %v1739_v1 = vsel %vm944_vm1, %v1719_v21, 0.0  ;;  %v1682_v21 = vmul.f32 0.6931472, %v2275_v3  ;;  %v1708_v2 = vsub.f32 %v2954_v40, %v1684_v59 }
 0x281   : > { %v3126_v53 = vpop.f32.mrb[17].mxu0  ;;  %v1212_v8 = vmul.f32 0.3, %v3124_v62  ;;  %v1722_v31 = vmul.f32 %v1706_v19, %v1226_v32  ;;  %v1195_v32 = vmul.f32 0.7, %v2796_v29  ;;  %v2277_v19 = vpop.eup %2276 }
 0x282   : > { %v1211_v23 = vmul.f32 0.3, %v3126_v53  ;;  %v1721_v44 = vmul.f32 %v1705_v27, %v1225_v50  ;;  %v1197_v50 = vmul.f32 0.7, %v2821_v14  ;;  %v1686_v27 = vmul.f32 0.6931472, %v2277_v19 }
 0x283   : > { %v1228_v12 = vadd.f32 %v1212_v8, %v1196_v30  ;;  %v1748_v58 = vsel %vm944_vm1, %v1722_v31, 0.0  ;;  %v1707_v30 = vsub.f32 %v2945_v11, %v1682_v21 }
 0x284   : > { %v3131_v34 = vpop.f32.mrb[18].mxu0  ;;  %1740 = vadd.xlane.f32.xlu0 %v1739_v1  ;;  %v1227_v45 = vadd.f32 %v1211_v23, %v1195_v32  ;;  %v1745_v8 = vsel %vm944_vm1, %v1721_v44, 0.0  ;;  %v1709_v44 = vsub.f32 %v2963_v37, %v1686_v27  ;;  %v1160_v37 = vmul.f32 0.1, %v3100_v57 }
 0x285   : > { %v3134_v51 = vpop.f32.mrb[19].mxu0  ;;  %v1724_v1 = vmul.f32 %v1708_v2, %v1228_v12 }
 0x286   : > { %v1213_v4 = vmul.f32 0.3, %v3134_v51  ;;  %v1723_v59 = vmul.f32 %v1707_v30, %v1227_v45  ;;  %v1159_v45 = vmul.f32 0.1, %v3108_v54  ;;  %v1161_v54 = vmul.f32 0.1, %v3118_v48 }
 0x287   : > { %v1754_v40 = vsel %vm944_vm1, %v1724_v1, 0.0 }
 0x288   : > { %v3139_v52 = vpop.f32.mrb[20].mxu0  ;;  %1749 = vadd.xlane.f32.xlu0 %v1748_v58  ;;  %v1229_v3 = vadd.f32 %v1213_v4, %v1197_v50  ;;  %v1751_v12 = vsel %vm944_vm1, %v1723_v59, 0.0 }
 0x289   : > { %v3142_v17 = vpop.f32.mrb[21].mxu0 }
 0x28a   : > { %v1725_v32 = vmul.f32 %v1709_v44, %v1229_v3 }
 0x28c   : > { %v3147_v35 = vpop.f32.mrb[22].mxu0  ;;  %1746 = vadd.xlane.f32.xlu0 %v1745_v8  ;;  %v1757_v2 = vsel %vm944_vm1, %v1725_v32, 0.0  ;;  %v1143_v8 = vmul.f32 0.9, %v2745_v0 }
 0x28d   : > { %v3150_v31 = vpop.f32.mrb[23].mxu0 }
 0x28e   : > { %v1175_v30 = vadd.f32 %v1159_v45, %v1143_v8 }
 0x290   : > { %v3154_v58 = vpop.f32.mrb[24].mxu0  ;;  %1755 = vadd.xlane.f32.xlu0 %v1754_v40  ;;  %v1144_v40 = vmul.f32 0.9, %v2761_v6 }
 0x291   : > { %v3157_v23 = vpop.f32.mrb[25].mxu0 }
 0x292   : > { %v1176_v32 = vadd.f32 %v1160_v37, %v1144_v40  ;;  %v1162_v40 = vmul.f32 0.1, %v3113_v47 }
 0x294   : > { %1752 = vadd.xlane.f32.xlu0 %v1751_v12 }
 0x298   : > { %1758 = vadd.xlane.f32.xlu0 %v1757_v2 }
 0x2c3   : > { %v1341_v11 = vpop.xlane.xlu1 %1340 }
 0x2c4   : > { %2278 = vlog2.f32 %v1341_v11 }
 0x2c7   : > { %v1344_v21 = vpop.xlane.xlu1 %1343 }
 0x2c8   : > { %2280 = vlog2.f32 %v1344_v21 }
 0x2cb   : > { %v1347_v19 = vpop.xlane.xlu1 %1346 }
 0x2cc   : > { %2282 = vlog2.f32 %v1347_v19 }
 0x2ce   : > { %v2279_v4 = vpop.eup %2278 }
 0x2cf   : > { %v1386_v1 = vmul.f32 0.6931472, %v2279_v4  ;;  %v1335_v50 = vpop.xlane.xlu1 %1334 }
 0x2d0   : > { %2284 = vlog2.f32 %v1335_v50 }
 0x2d1   : > { %v1415_v27 = vsub.f32 %v2980_v10, %v1386_v1  ;;  %v1145_v10 = vmul.f32 0.9, %v2769_v22  ;;  %v1158_v22 = vmul.f32 0.1, %v3094_v13 }
 0x2d2   : > { %v2281_v3 = vpop.eup %2280 }
 0x2d3   : > { %v1388_v59 = vmul.f32 0.6931472, %v2281_v3  ;;  %v1338_v44 = vpop.xlane.xlu0 %1337  ;;  %v1431_v12 = vmul.f32 %v1415_v27, %v1175_v30  ;;  %v1350_v2 = vpop.xlane.xlu1 %1349  ;;  %v1177_v4 = vadd.f32 %v1161_v54, %v1145_v10  ;;  %v1214_v54 = vmul.f32 0.3, %v3131_v34 }
 0x2d4   : > { %2286 = vlog2.f32 %v1338_v44  ;;  %v1146_v44 = vmul.f32 0.9, %v2788_v41  ;;  %v1163_v41 = vmul.f32 0.1, %v3126_v53  ;;  %v1215_v53 = vmul.f32 0.3, %v3142_v17 }
 0x2d5   : > { %v1416_v0 = vsub.f32 %v2984_v33, %v1388_v59  ;;  %2288 = vlog2.f32 %v1350_v2  ;;  %v1451_v57 = vsel %vm944_vm1, %v1431_v12, 0.0  ;;  %v1142_v12 = vmul.f32 0.9, %v2742_v56 }
 0x2d6   : > { %v2283_v11 = vpop.eup %2282  ;;  %1452 = vadd.xlane.f32.xlu1 %v1451_v57 }
 0x2d7   : > { %v1390_v21 = vmul.f32 0.6931472, %v2283_v11  ;;  %v1650_v19 = vpop.xlane.xlu0 %1649  ;;  %v1432_v6 = vmul.f32 %v1416_v0, %v1176_v32  ;;  %v1353_v45 = vpop.xlane.xlu1 %1352  ;;  %v1198_v11 = vmul.f32 0.7, %v2839_v7  ;;  %v1174_v47 = vadd.f32 %v1158_v22, %v1142_v12 }
 0x2d8   : > { %2290 = vlog2.f32 %v1650_v19 }
 0x2d9   : > { %v1417_v8 = vsub.f32 %v2988_v16, %v1390_v21  ;;  %2292 = vlog2.f32 %v1353_v45  ;;  %v1454_v48 = vsel %vm944_vm1, %v1432_v6, 0.0  ;;  %v1178_v21 = vadd.f32 %v1162_v40, %v1146_v44 }
 0x2da   : > { %1455 = vadd.xlane.f32.xlu1 %v1454_v48  ;;  %v2285_v33 = vpop.eup %2284  ;;  %v1147_v45 = vmul.f32 0.9, %v2796_v29  ;;  %v1164_v29 = vmul.f32 0.1, %v3124_v62 }
 0x2db   : > { %v1653_v1 = vpop.xlane.xlu0 %1652  ;;  %v1433_v37 = vmul.f32 %v1417_v8, %v1177_v4  ;;  %v1382_v50 = vmul.f32 0.6931472, %v2285_v33  ;;  %v1356_v30 = vpop.xlane.xlu1 %1355  ;;  %v1199_v4 = vmul.f32 0.7, %v2847_v36  ;;  %v1230_v33 = vadd.f32 %v1214_v54, %v1198_v11 }
 0x2dc   : > { %2294 = vlog2.f32 %v1653_v1  ;;  %v1179_v22 = vadd.f32 %v1163_v41, %v1147_v45  ;;  %v1165_v11 = vmul.f32 0.1, %v3134_v51  ;;  %v1149_v41 = vmul.f32 0.9, %v2821_v14 }
 0x2dd   : > { %2296 = vlog2.f32 %v1356_v30  ;;  %v1457_v27 = vsel %vm944_vm1, %v1433_v37, 0.0  ;;  %v1413_v16 = vsub.f32 %v2995_v15, %v1382_v50  ;;  %v1217_v51 = vmul.f32 0.3, %v3150_v31 }
 0x2de   : > { %v2287_v3 = vpop.eup %2286  ;;  %1458 = vadd.xlane.f32.xlu1 %v1457_v27  ;;  %v1181_v14 = vadd.f32 %v1165_v11, %v1149_v41 }
 0x2df   : > { %v2289_v59 = vpop.eup %2288  ;;  %v1384_v32 = vmul.f32 0.6931472, %v2287_v3  ;;  %v1656_v2 = vpop.xlane.xlu0 %1655  ;;  %v1429_v57 = vmul.f32 %v1413_v16, %v3104_v26  ;;  %v1148_v16 = vmul.f32 0.9, %v2813_v24 }
 0x2e0   : > { %v1392_v0 = vmul.f32 0.6931472, %v2289_v59  ;;  %v1359_v13 = vpop.xlane.xlu1 %1358  ;;  %2298 = vlog2.f32 %v1656_v2  ;;  %v1200_v59 = vmul.f32 0.7, %v2866_v9 }
 0x2e1   : > { %v1414_v15 = vsub.f32 %v3001_v60, %v1384_v32  ;;  %2300 = vlog2.f32 %v1359_v13  ;;  %v1445_v19 = vsel %vm944_vm1, %v1429_v57, 0.0  ;;  %v1216_v32 = vmul.f32 0.3, %v3139_v52 }
 0x2e2   : > { %v2291_v10 = vpop.eup %2290  ;;  %v1418_v56 = vsub.f32 %v2992_v25, %v1392_v0  ;;  %1446 = vadd.xlane.f32.xlu1 %v1445_v19  ;;  %v1231_v0 = vadd.f32 %v1215_v53, %v1199_v4  ;;  %v1180_v24 = vadd.f32 %v1164_v29, %v1148_v16  ;;  %v1150_v53 = vmul.f32 0.9, %v2839_v7 }
 0x2e3   : > { %v2293_v6 = vpop.eup %2292  ;;  %v1688_v26 = vmul.f32 0.6931472, %v2291_v10  ;;  %v1659_v8 = vpop.xlane.xlu0 %1658  ;;  %v1430_v48 = vmul.f32 %v1414_v15, %v1174_v47  ;;  %v1218_v29 = vmul.f32 0.3, %v3147_v35 }
 0x2e4   : > { %v1394_v60 = vmul.f32 0.6931472, %v2293_v6  ;;  %v1362_v1 = vpop.xlane.xlu1 %1361  ;;  %2302 = vlog2.f32 %v1659_v8  ;;  %v1434_v37 = vmul.f32 %v1418_v56, %v1178_v21  ;;  %v1201_v21 = vmul.f32 0.7, %v2874_v55 }
 0x2e5   : > { %v1710_v25 = vsub.f32 %v3004_v42, %v1688_v26  ;;  %2304 = vlog2.f32 %v1362_v1  ;;  %v1448_v50 = vsel %vm944_vm1, %v1430_v48, 0.0  ;;  %v1232_v6 = vadd.f32 %v1216_v32, %v1200_v59 }
 0x2e6   : > { %v2295_v30 = vpop.eup %2294  ;;  %v1419_v27 = vsub.f32 %v3010_v49, %v1394_v60  ;;  %v1460_v3 = vsel %vm944_vm1, %v1434_v37, 0.0  ;;  %1449 = vadd.xlane.f32.xlu0 %v1448_v50  ;;  %v1167_v59 = vmul.f32 0.1, %v3142_v17 }
 0x2e7   : > { %v2297_v40 = vpop.eup %2296  ;;  %v1690_v44 = vmul.f32 0.6931472, %v2295_v30  ;;  %1461 = vadd.xlane.f32.xlu1 %v1460_v3  ;;  %v1662_v42 = vpop.xlane.xlu0 %1661  ;;  %v1726_v12 = vmul.f32 %v1710_v25, %v1230_v33  ;;  %v1166_v33 = vmul.f32 0.1, %v3131_v34  ;;  %v1202_v25 = vmul.f32 0.7, %v2892_v38 }
 0x2e8   : > { %v1396_v2 = vmul.f32 0.6931472, %v2297_v40  ;;  %v1365_v54 = vpop.xlane.xlu1 %1364  ;;  %2306 = vlog2.f32 %v1662_v42  ;;  %v1435_v62 = vmul.f32 %v1419_v27, %v1179_v22  ;;  %v1233_v3 = vadd.f32 %v1217_v51, %v1201_v21 }
 0x2e9   : > { %v1711_v49 = vsub.f32 %v3013_v20, %v1690_v44  ;;  %2308 = vlog2.f32 %v1365_v54  ;;  %v1760_v13 = vsel %vm944_vm1, %v1726_v12, 0.0  ;;  %v1182_v7 = vadd.f32 %v1166_v33, %v1150_v53 }
 0x2ea   : > { %v2299_v57 = vpop.eup %2298  ;;  %v1420_v47 = vsub.f32 %v3019_v61, %v1396_v2  ;;  %v1463_v15 = vsel %vm944_vm1, %v1435_v62, 0.0  ;;  %1761 = vadd.xlane.f32.xlu0 %v1760_v13  ;;  %v1151_v54 = vmul.f32 0.9, %v2847_v36  ;;  %v1234_v62 = vadd.f32 %v1218_v29, %v1202_v25  ;;  %v3549_v29 = vld [vmem:[#allocation6_spill] sm:$0xff] }
 0x2eb   : > { %v2301_v10 = vpop.eup %2300  ;;  %v1692_v56 = vmul.f32 0.6931472, %v2299_v57  ;;  %1464 = vadd.xlane.f32.xlu1 %v1463_v15  ;;  %v1665_v20 = vpop.xlane.xlu0 %1664  ;;  %v1727_v19 = vmul.f32 %v1711_v49, %v1231_v0  ;;  %v1219_v13 = vmul.f32 0.3, %v3157_v23  ;;  %v1153_v53 = vmul.f32 0.9, %v2874_v55 }
 0x2ec   : > { %v1398_v45 = vmul.f32 0.6931472, %v2301_v10  ;;  %v1368_v4 = vpop.xlane.xlu1 %1367  ;;  %2310 = vlog2.f32 %v1665_v20  ;;  %v1436_v26 = vmul.f32 %v1420_v47, %v1180_v24  ;;  %v1168_v24 = vmul.f32 0.1, %v3139_v52 }
 0x2ed   : > { %v1712_v61 = vsub.f32 %v3022_v39, %v1692_v56  ;;  %2312 = vlog2.f32 %v1368_v4  ;;  %v1763_v8 = vsel %vm944_vm1, %v1727_v19, 0.0  ;;  %v1183_v11 = vadd.f32 %v1167_v59, %v1151_v54 }
 0x2ee   : > { %v2303_v48 = vpop.eup %2302  ;;  %v1421_v60 = vsub.f32 %v3027_v28, %v1398_v45  ;;  %v1466_v1 = vsel %vm944_vm1, %v1436_v26, 0.0  ;;  %1764 = vadd.xlane.f32.xlu0 %v1763_v8  ;;  %v1203_v10 = vmul.f32 0.7, %v2903_v18  ;;  %v1220_v56 = vmul.f32 0.3, %v3154_v58  ;;  %v3546_v45 = vld [vmem:[#allocation4_spill] sm:$0xff] }
 0x2ef   : > { %v2305_v37 = vpop.eup %2304  ;;  %v1694_v50 = vmul.f32 0.6931472, %v2303_v48  ;;  %1467 = vadd.xlane.f32.xlu1 %v1466_v1  ;;  %v1668_v39 = vpop.xlane.xlu0 %1667  ;;  %v1728_v30 = vmul.f32 %v1712_v61, %v1232_v6  ;;  %v1169_v61 = vmul.f32 0.1, %v3150_v31  ;;  %v3547_v8 = vld [vmem:[#allocation5_spill] sm:$0xff] }
 0x2f0   : > { %v1400_v22 = vmul.f32 0.6931472, %v2305_v37  ;;  %v1371_v27 = vpop.xlane.xlu1 %1370  ;;  %2314 = vlog2.f32 %v1668_v39  ;;  %v1437_v34 = vmul.f32 %v1421_v60, %v1181_v14  ;;  %v1235_v52 = vadd.f32 %v1219_v13, %v1203_v10  ;;  %v3548_v14 = vld [vmem:[#allocation3_spill] sm:$0xff] }
 0x2f1   : > { %v1713_v28 = vsub.f32 %v3030_v5, %v1694_v50  ;;  %2316 = vlog2.f32 %v1371_v27  ;;  %v1766_v40 = vsel %vm944_vm1, %v1728_v30, 0.0  ;;  %v1204_v60 = vmul.f32 0.7, %v3548_v14 }
 0x2f2   : > { %v2307_v16 = vpop.eup %2306  ;;  %v1422_v44 = vsub.f32 %v3037_v46, %v1400_v22  ;;  %v1469_v42 = vsel %vm944_vm1, %v1437_v34, 0.0  ;;  %1767 = vadd.xlane.f32.xlu0 %v1766_v40  ;;  %v1170_v27 = vmul.f32 0.1, %v3147_v35  ;;  %v1185_v34 = vadd.f32 %v1169_v61, %v1153_v53 }
 0x2f3   : > { %v2309_v12 = vpop.eup %2308  ;;  %v1696_v32 = vmul.f32 0.6931472, %v2307_v16  ;;  %1470 = vadd.xlane.f32.xlu1 %v1469_v42  ;;  %v1729_v2 = vmul.f32 %v1713_v28, %v1233_v3  ;;  %v1236_v30 = vadd.f32 %v1220_v56, %v1204_v60  ;;  %v3550_v3 = vld [vmem:[#allocation7_spill] sm:$0xff] }
 0x2f4   : > { %v1402_v5 = vmul.f32 0.6931472, %v2309_v12  ;;  %v1374_v0 = vpop.xlane.xlu1 %1373  ;;  %v1438_v49 = vmul.f32 %v1422_v44, %v1182_v7  ;;  %v1154_v7 = vmul.f32 0.9, %v2892_v38  ;;  %v1172_v38 = vmul.f32 0.1, %v3154_v58 }
 0x2f5   : > { %v1714_v57 = vsub.f32 %v3040_v43, %v1696_v32  ;;  %2318 = vlog2.f32 %v1374_v0  ;;  %v1769_v46 = vsel %vm944_vm1, %v1729_v2, 0.0  ;;  %v1152_v43 = vmul.f32 0.9, %v2866_v9  ;;  %v3551_v2 = vld [vmem:[#allocation8_spill] sm:$0xff] }
 0x2f6   : > { %v2311_v17 = vpop.eup %2310  ;;  %v1423_v47 = vsub.f32 %v3048_v63, %v1402_v5  ;;  %v1472_v15 = vsel %vm944_vm1, %v1438_v49, 0.0  ;;  %1770 = vadd.xlane.f32.xlu0 %v1769_v46  ;;  %v1186_v12 = vadd.f32 %v1170_v27, %v1154_v7  ;;  %v1171_v32 = vmul.f32 0.1, %v3157_v23 }
 0x2f7   : > { %v2313_v36 = vpop.eup %2312  ;;  %v1698_v21 = vmul.f32 0.6931472, %v2311_v17  ;;  %1473 = vadd.xlane.f32.xlu1 %v1472_v15  ;;  %v1730_v41 = vmul.f32 %v1714_v57, %v1234_v62  ;;  %v1184_v51 = vadd.f32 %v1168_v24, %v1152_v43  ;;  %v1155_v5 = vmul.f32 0.9, %v2903_v18  ;;  %v3552_v57 = vld [vmem:[#allocation9_spill] sm:$0xff] }
 0x2f8   : > { %v1404_v20 = vmul.f32 0.6931472, %v2313_v36  ;;  %v1377_v19 = vpop.xlane.xlu1 %1376  ;;  %v1439_v6 = vmul.f32 %v1423_v47, %v1183_v11  ;;  %v1156_v23 = vmul.f32 0.9, %v3548_v14  ;;  %v3553_v36 = vld [vmem:[#allocation10_spill] sm:$0xff] }
 0x2f9   : > { %v1715_v4 = vsub.f32 %v3546_v45, %v1698_v21  ;;  %2320 = vlog2.f32 %v1377_v19  ;;  %v1772_v63 = vsel %vm944_vm1, %v1730_v41, 0.0  ;;  %v1187_v13 = vadd.f32 %v1171_v32, %v1155_v5 }
 0x2fa   : > { %v2315_v26 = vpop.eup %2314  ;;  %v1424_v48 = vsub.f32 %v3547_v8, %v1404_v20  ;;  %v1475_v33 = vsel %vm944_vm1, %v1439_v6, 0.0  ;;  %1773 = vadd.xlane.f32.xlu0 %v1772_v63  ;;  %v1188_v15 = vadd.f32 %v1172_v38, %v1156_v23  ;;  %v3554_v19 = vlaneseq  ;;  %v3270_v8 = vld [vmem:[%s3264_s24 + $0x8] sm:$0xff] }
 0x2fb   : > { %v2317_v9 = vpop.eup %2316  ;;  %v1700_v1 = vmul.f32 0.6931472, %v2315_v26  ;;  %1476 = vadd.xlane.f32.xlu1 %v1475_v33  ;;  %v1731_v37 = vmul.f32 %v1715_v4, %v1235_v52  ;;  %v3266_v63 = vstv %s2040_s21  ;;  %v364_v33 = vld [vmem:[%s3264_s24] sm:$0xff] }
 0x2fc   : > { %v1406_v25 = vmul.f32 0.6931472, %v2317_v9  ;;  %v1380_v50 = vpop.xlane.xlu1 %1379  ;;  %v1440_v39 = vmul.f32 %v1424_v48, %v1184_v51  ;;  %v3256_v6 = vshrl.u32 %v3554_v19, 7 }
 0x2fd   : > { %v1716_v22 = vsub.f32 %v3549_v29, %v1700_v1  ;;  %2322 = vlog2.f32 %v1380_v50  ;;  %v1775_v31 = vsel %vm944_vm1, %v1731_v37, 0.0  ;;  %v366_v37 = vld [vmem:[%s3264_s24 + $0x10] sm:$0xff] }
 0x2fe   : > { %v1425_v28 = vsub.f32 %v3550_v3, %v1406_v25  ;;  %v1478_v40 = vsel %vm944_vm1, %v1440_v39, 0.0  ;;  %1776 = vadd.xlane.f32.xlu0 %v1775_v31  ;;  %v383_v45 = vadd.s32 8, %v3256_v6  ;;  %v384_v26 = vadd.s32 16, %v3256_v6 }
 0x2ff   : > { %v2319_v16 = vpop.eup %2318  ;;  %1479 = vadd.xlane.f32.xlu1 %v1478_v40  ;;  %v1732_v55 = vmul.f32 %v1716_v22, %v1236_v30  ;;  %v3278_v9 = vadd.s32 %v3266_v63, %v3256_v6  ;;  %v385_v39 = vadd.s32 24, %v3256_v6  ;;  %v386_v29 = vadd.s32 32, %v3256_v6 }
 0x300   : > { %v1408_v59 = vmul.f32 0.6931472, %v2319_v16  ;;  %v1441_v44 = vmul.f32 %v1425_v28, %v1185_v34  ;;  %v3273_v48 = vadd.s32 %v3266_v63, %v383_v45  ;;  %v3284_v53 = vadd.s32 %v3266_v63, %v384_v26  ;;  %v367_v28 = vld [vmem:[%s3264_s24 + $0x18] sm:$0xff] }
 0x301   : > { %v1778_v42 = vsel %vm944_vm1, %v1732_v55, 0.0  ;;  %vm415_vm3 = vcmp.lt.s32.totalorder %v3278_v9, 512  ;;  %v3298_v40 = vadd.s32 %v3266_v63, %v385_v39  ;;  %v387_v7 = vadd.s32 40, %v3256_v6 }
 0x302   : > { %v1426_v35 = vsub.f32 %v3551_v2, %v1408_v59  ;;  %v1481_v54 = vsel %vm944_vm1, %v1441_v44, 0.0  ;;  %1779 = vadd.xlane.f32.xlu0 %v1778_v42  ;;  %vm417_vm4 = vcmp.lt.s32.totalorder %v3284_v53, 512  ;;  %v3304_v59 = vld [vmem:[%s3264_s24 + $0x20] sm:$0xff]  ;;  %v3307_v44 = vadd.s32 %v3266_v63, %v386_v29 }
 0x303   : > { %v2321_v62 = vpop.eup %2320  ;;  %1482 = vadd.xlane.f32.xlu1 %v1481_v54  ;;  %v389_v2 = vadd.s32 56, %v3256_v6  ;;  %vm418_vm6 = vcmp.lt.s32.totalorder %v3298_v40, 512  ;;  %v390_v38 = vadd.s32 64, %v3256_v6  ;;  %v391_v19 = vadd.s32 72, %v3256_v6 }
 0x304   : > { %v1410_v0 = vmul.f32 0.6931472, %v2321_v62  ;;  %v1442_v49 = vmul.f32 %v1426_v35, %v1186_v12  ;;  %v388_v35 = vadd.s32 48, %v3256_v6  ;;  %vm419_vm7 = vcmp.lt.s32.totalorder %v3307_v44, 512 }
 0x305   : > { %v3361_v39 = vadd.s32 %v3266_v63, %v391_v19  ;;  %v392_v29 = vadd.s32 80, %v3256_v6 }
 0x306   : > { %v1427_v46 = vsub.f32 %v3552_v57, %v1410_v0  ;;  %v1484_v17 = vsel %vm944_vm1, %v1442_v49, 0.0  ;;  %v3324_v57 = vld [vmem:[%s3264_s24 + $0x28] sm:$0xff] }
 0x307   : > { %v2323_v24 = vpop.eup %2322  ;;  %1485 = vadd.xlane.f32.xlu1 %v1484_v17  ;;  %v3330_v17 = vadd.s32 %v3266_v63, %v389_v2  ;;  %vm424_vm12 = vcmp.lt.s32.totalorder %v3361_v39, 512 }
 0x308   : > { %v1412_v11 = vmul.f32 0.6931472, %v2323_v24  ;;  %v1443_v47 = vmul.f32 %v1427_v46, %v1187_v13  ;;  %v3327_v46 = vadd.s32 %v3266_v63, %v387_v7  ;;  %v3333_v24 = vadd.s32 %v3266_v63, %v388_v35  ;;  %v3378_v7 = vld [vmem:[%s3264_s24 + $0x40] sm:$0xff] }
 0x309   : > { %v1738_v41 = vpop.xlane.xlu0 %1737  ;;  %vm422_vm9 = vcmp.lt.s32.totalorder %v3330_v17, 512  ;;  %v393_v35 = vadd.s32 88, %v3256_v6 }
 0x30a   : > { %v1428_v18 = vsub.f32 %v3553_v36, %v1412_v11  ;;  %v1487_v10 = vsel %vm944_vm1, %v1443_v47, 0.0  ;;  %v1735_v4 = vpop.xlane.xlu1 %1734  ;;  %v1782_v51 = vsub.f32 0.0, %v1738_v41  ;;  %vm420_vm8 = vcmp.lt.s32.totalorder %v3327_v46, 512 }
 0x30b   : > { %1488 = vadd.xlane.f32.xlu1 %v1487_v10  ;;  %v1781_v61 = vsub.f32 0.0, %v1735_v4  ;;  %vm421_vm10 = vcmp.lt.s32.totalorder %v3333_v24, 512 }
 0x30c   : > { %v1444_v58 = vmul.f32 %v1428_v18, %v1188_v15  ;;  %v1798_v25 = vmul.f32 %v1782_v51, %v3270_v8 }
 0x30d   : > { %v1744_v43 = vpop.xlane.xlu0 %1743  ;;  %v1797_v50 = vmul.f32 %v1781_v61, %v364_v33 }
 0x30e   : > { %v1490_v21 = vsel %vm944_vm1, %v1444_v58, 0.0  ;;  %vm416_vm1 = vcmp.lt.s32.totalorder %v3273_v48, 512  ;;  %v1784_v34 = vsub.f32 0.0, %v1744_v43  ;;  %v3340_v58 = vld [vmem:[%s3264_s24 + $0x30] sm:$0xff]  ;;  %v3344_v43 = vadd.s32 %v3266_v63, %v390_v38 }
 0x30f   : > { %1491 = vadd.xlane.f32.xlu1 %v1490_v21  ;;  %v1871_v31 = vsel %vm416_vm1, %v1798_v25, 0.0  ;;  %v1870_v27 = vsel %vm415_vm3, %v1797_v50, 0.0 }
 0x310   : > { %v1887_v12 = vsel %vm1829_vm5, %v1871_v31, 0.0  ;;  %v1886_v32 = vsel %vm1829_vm5, %v1870_v27, 0.0  ;;  %v1800_v54 = vmul.f32 %v1784_v34, %v367_v28  ;;  %vm423_vm11 = vcmp.lt.s32.totalorder %v3344_v43, 512  ;;  %v3370_v34 = vld [vmem:[%s3264_s24 + $0x38] sm:$0xff] }
 0x311   : > { %v1741_v56 = vpop.xlane.xlu0 %1740  ;;  %v1888_v0 = vadd.f32 %v1887_v12, %v1886_v32  ;;  %v3385_v32 = vadd.s32 %v3266_v63, %v392_v29 }
 0x312   : > { %v1783_v14 = vsub.f32 0.0, %v1741_v56  ;;  %v1873_v47 = vsel %vm418_vm6, %v1800_v54, 0.0  ;;  %v394_v54 = vadd.s32 96, %v3256_v6 }
 0x313   : > { %vm425_vm13 = vcmp.lt.s32.totalorder %v3385_v32, 512 }
 0x314   : > { %v1799_v30 = vmul.f32 %v1783_v14, %v366_v37 }
 0x315   : > { %v3253_v20 = vpop.xlane.xlu0 %1749 }
 0x316   : > { %v1872_v55 = vsel %vm417_vm4, %v1799_v30, 0.0  ;;  %v1786_v49 = vsub.f32 0.0, %v3253_v20 }
 0x317   : > { %v1889_v62 = vsel %vm1829_vm5, %v1872_v55, 0.0 }
 0x318   : > { %v1890_v15 = vadd.f32 %v1889_v62, %v1888_v0  ;;  %v1802_v41 = vmul.f32 %v1786_v49, %v3324_v57 }
 0x319   : > { %v1747_v52 = vpop.xlane.xlu0 %1746 }
 0x31a   : > { %v1785_v16 = vsub.f32 0.0, %v1747_v52  ;;  %v1891_v52 = vsel %vm1829_vm5, %v1873_v47, 0.0  ;;  %v1875_v50 = vsel %vm420_vm8, %v1802_v41, 0.0  ;;  %v3405_v41 = vadd.s32 %v3266_v63, %v393_v35 }
 0x31b   : > { %v1892_v51 = vadd.f32 %v1891_v52, %v1890_v15  ;;  %v1895_v62 = vsel %vm1829_vm5, %v1875_v50, 0.0 }
 0x31c   : > { %v1801_v5 = vmul.f32 %v1785_v16, %v3304_v59  ;;  %vm426_vm14 = vcmp.lt.s32.totalorder %v3405_v41, 512 }
 0x31d   : > { %v3280_v60 = vpop.xlane.xlu0 %1755 }
 0x31e   : > { %v1874_v10 = vsel %vm419_vm7, %v1801_v5, 0.0  ;;  %v1788_v31 = vsub.f32 0.0, %v3280_v60 }
 0x31f   : > { %v1893_v61 = vsel %vm1829_vm5, %v1874_v10, 0.0 }
 0x320   : > { %v1804_v40 = vmul.f32 %v1788_v31, %v3370_v34 }
 0x321   : > { %v1753_v3 = vpop.xlane.xlu0 %1752 }
 0x322   : > { %v1787_v36 = vsub.f32 0.0, %v1753_v3  ;;  %v1877_v44 = vsel %vm422_vm9, %v1804_v40, 0.0  ;;  %v397_v40 = vadd.s32 120, %v3256_v6 }
 0x325   : > { %v3321_v13 = vpop.xlane.xlu0 %1758 }
 0x363   : > { %v1453_v1 = vpop.xlane.xlu1 %1452 }
 0x364   : > { %v1495_v23 = vsub.f32 0.0, %v1453_v1 }
 0x366   : > { %v1511_v45 = vmul.f32 %v1495_v23, %v366_v37 }
 0x367   : > { %v1456_v22 = vpop.xlane.xlu1 %1455 }
 0x368   : > { %v1496_v21 = vsub.f32 0.0, %v1456_v22  ;;  %v1894_v22 = vadd.f32 %v1893_v61, %v1892_v51  ;;  %v1815_v9 = vsel %vm417_vm4, %v1511_v45, 0.0  ;;  %v3416_v51 = vld [vmem:[%s3264_s24 + $0x58] sm:$0xff]  ;;  %v3419_v61 = vadd.s32 %v3266_v63, %v394_v54 }
 0x369   : > { %v1833_v12 = vsel %vm1829_vm5, %v1815_v9, 0.0 }
 0x36a   : > { %v1512_v14 = vmul.f32 %v1496_v21, %v367_v28  ;;  %v1789_v28 = vsub.f32 0.0, %v3321_v13  ;;  %v1896_v49 = vadd.f32 %v1895_v62, %v1894_v22  ;;  %v3402_v21 = vld [vmem:[%s3264_s24 + $0x50] sm:$0xff]  ;;  %vm427_vm15 = vcmp.lt.s32.totalorder %v3419_v61, 512 }
 0x36b   : > { %v3309_v42 = vpop.xlane.xlu1 %1458 }
 0x36c   : > { %v1497_v1 = vsub.f32 0.0, %v3309_v42  ;;  %v1816_v60 = vsel %vm418_vm6, %v1512_v14, 0.0  ;;  %v1805_v13 = vmul.f32 %v1789_v28, %v3378_v7  ;;  %v396_v28 = vadd.s32 112, %v3256_v6 }
 0x36d   : > { %v1835_v23 = vsel %vm1829_vm5, %v1816_v60, 0.0 }
 0x36e   : > { %v1513_v48 = vmul.f32 %v1497_v1, %v3304_v59 }
 0x36f   : > { %v1447_v11 = vpop.xlane.xlu1 %1446 }
 0x370   : > { %v1493_v18 = vsub.f32 0.0, %v1447_v11  ;;  %v3395_v11 = vld [vmem:[%s3264_s24 + $0x48] sm:$0xff]  ;;  %v1817_v47 = vsel %vm419_vm7, %v1513_v48, 0.0 }
 0x372   : > { %v1509_v56 = vmul.f32 %v1493_v18, %v364_v33  ;;  %v1803_v33 = vmul.f32 %v1787_v36, %v3340_v58 }
 0x373   : > { %v1450_v20 = vpop.xlane.xlu0 %1449 }
 0x374   : > { %v1462_v4 = vpop.xlane.xlu1 %1461  ;;  %v1494_v26 = vsub.f32 0.0, %v1450_v20  ;;  %v1813_v25 = vsel %vm415_vm3, %v1509_v56, 0.0  ;;  %v1876_v3 = vsel %vm421_vm10, %v1803_v33, 0.0  ;;  %v395_v20 = vadd.s32 104, %v3256_v6 }
 0x375   : > { %v1830_v16 = vsel %vm1829_vm5, %v1813_v25, 0.0  ;;  %v1498_v53 = vsub.f32 0.0, %v1462_v4  ;;  %v1897_v38 = vsel %vm1829_vm5, %v1876_v3, 0.0  ;;  %v1878_v4 = vsel %vm423_vm11, %v1805_v13, 0.0 }
 0x376   : > { %v1510_v37 = vmul.f32 %v1494_v26, %v3270_v8  ;;  %v1898_v19 = vadd.f32 %v1897_v38, %v1896_v49  ;;  %v1837_v26 = vsel %vm1829_vm5, %v1817_v47, 0.0  ;;  %v3431_v22 = vadd.s32 %v3266_v63, %v395_v20 }
 0x377   : > { %v1762_v30 = vpop.xlane.xlu0 %1761  ;;  %v1514_v15 = vmul.f32 %v1498_v53, %v3324_v57  ;;  %v3457_v49 = vadd.s32 %v3266_v63, %v396_v28  ;;  %vm1926_vm3 = vcmp.eq.s32.totalorder %v3256_v6, 0 }
 0x378   : > { %v1814_v8 = vsel %vm416_vm1, %v1510_v37, 0.0  ;;  %v1465_v27 = vpop.xlane.xlu1 %1464  ;;  %v1790_v59 = vsub.f32 0.0, %v1762_v30  ;;  %v1899_v37 = vsel %vm1829_vm5, %v1877_v44, 0.0  ;;  %v3428_v30 = vld [vmem:[%s3264_s24 + $0x60] sm:$0xff]  ;;  %vm428_vm0 = vcmp.lt.s32.totalorder %v3431_v22, 512 }
 0x379   : > { %v1831_v55 = vsel %vm1829_vm5, %v1814_v8, 0.0  ;;  %v1499_v36 = vsub.f32 0.0, %v1465_v27  ;;  %v1818_v33 = vsel %vm420_vm8, %v1514_v15, 0.0  ;;  %v1900_v31 = vadd.f32 %v1899_v37, %v1898_v19 }
 0x37a   : > { %v1832_v42 = vadd.f32 %v1831_v55, %v1830_v16  ;;  %v1806_v57 = vmul.f32 %v1790_v59, %v3395_v11  ;;  %v1901_v27 = vsel %vm1829_vm5, %v1878_v4, 0.0  ;;  %v1839_v3 = vsel %vm1829_vm5, %v1818_v33, 0.0 }
 0x37b   : > { %v1765_v2 = vpop.xlane.xlu0 %1764  ;;  %v1515_v14 = vmul.f32 %v1499_v36, %v3340_v58  ;;  %v1902_v54 = vadd.f32 %v1901_v27, %v1900_v31  ;;  %vm429_vm2 = vcmp.lt.s32.totalorder %v3457_v49, 512 }
 0x37c   : > { %v1834_v5 = vadd.f32 %v1833_v12, %v1832_v42  ;;  %v1468_v0 = vpop.xlane.xlu1 %1467  ;;  %v1791_v18 = vsub.f32 0.0, %v1765_v2  ;;  %v1879_v46 = vsel %vm424_vm12, %v1806_v57, 0.0  ;;  %v3448_v2 = vld [vmem:[%s3264_s24 + $0x68] sm:$0xff] }
 0x37d   : > { %v1500_v1 = vsub.f32 0.0, %v1468_v0  ;;  %v1819_v16 = vsel %vm421_vm10, %v1515_v14, 0.0  ;;  %v1903_v42 = vsel %vm1829_vm5, %v1879_v46, 0.0 }
 0x37e   : > { %v1836_v10 = vadd.f32 %v1835_v23, %v1834_v5  ;;  %v1807_v25 = vmul.f32 %v1791_v18, %v3402_v21  ;;  %v1841_v5 = vsel %vm1829_vm5, %v1819_v16, 0.0  ;;  %v1904_v38 = vadd.f32 %v1903_v42, %v1902_v54 }
 0x37f   : > { %v1768_v56 = vpop.xlane.xlu0 %1767  ;;  %v1516_v55 = vmul.f32 %v1500_v1, %v3370_v34 }
 0x380   : > { %v1471_v52 = vpop.xlane.xlu1 %1470  ;;  %v1792_v45 = vsub.f32 0.0, %v1768_v56  ;;  %v1838_v50 = vadd.f32 %v1837_v26, %v1836_v10  ;;  %v1880_v60 = vsel %vm425_vm13, %v1807_v25, 0.0  ;;  %v378_v56 = vld [vmem:[%s3264_s24 + $0x70] sm:$0xff] }
 0x381   : > { %v1501_v12 = vsub.f32 0.0, %v1471_v52  ;;  %v1905_v59 = vsel %vm1829_vm5, %v1880_v60, 0.0  ;;  %v1820_v13 = vsel %vm422_vm9, %v1516_v55, 0.0  ;;  %v414_v52 = vadd.s32 %v3266_v63, %v397_v40  ;;  %v379_v63 = vld [vmem:[%s3264_s24 + $0x78] sm:$0xff] }
 0x382   : > { %v1808_v58 = vmul.f32 %v1792_v45, %v3416_v51  ;;  %v1840_v53 = vadd.f32 %v1839_v3, %v1838_v50  ;;  %v1906_v44 = vadd.f32 %v1905_v59, %v1904_v38 }
 0x383   : > { %v1771_v29 = vpop.xlane.xlu0 %1770  ;;  %v1517_v36 = vmul.f32 %v1501_v12, %v3378_v7  ;;  %v1843_v7 = vsel %vm1829_vm5, %v1820_v13, 0.0  ;;  %vm430_vm1 = vcmp.lt.s32.totalorder %v414_v52, 512 }
 0x384   : > { %v1474_v9 = vpop.xlane.xlu1 %1473  ;;  %v1793_v8 = vsub.f32 0.0, %v1771_v29  ;;  %v1881_v24 = vsel %vm426_vm14, %v1808_v58, 0.0  ;;  %v1842_v15 = vadd.f32 %v1841_v5, %v1840_v53 }
 0x385   : > { %v1502_v0 = vsub.f32 0.0, %v1474_v9  ;;  %v1907_v18 = vsel %vm1829_vm5, %v1881_v24, 0.0  ;;  %v1821_v25 = vsel %vm423_vm11, %v1517_v36, 0.0 }
 0x386   : > { %v1809_v48 = vmul.f32 %v1793_v8, %v3428_v30  ;;  %v1908_v33 = vadd.f32 %v1907_v18, %v1906_v44  ;;  %v1844_v1 = vadd.f32 %v1843_v7, %v1842_v15 }
 0x387   : > { %v1774_v35 = vpop.xlane.xlu0 %1773  ;;  %v1518_v45 = vmul.f32 %v1502_v0, %v3395_v11 }
 0x388   : > { %v1477_v34 = vpop.xlane.xlu1 %1476  ;;  %v1794_v62 = vsub.f32 0.0, %v1774_v35  ;;  %v1882_v23 = vsel %vm427_vm15, %v1809_v48, 0.0 }
 0x389   : > { %v1503_v10 = vsub.f32 0.0, %v1477_v34  ;;  %v1909_v4 = vsel %vm1829_vm5, %v1882_v23, 0.0  ;;  %v1822_v9 = vsel %vm424_vm12, %v1518_v45, 0.0 }
 0x38a   : > { %v1810_v47 = vmul.f32 %v1794_v62, %v3448_v2  ;;  %v1910_v11 = vadd.f32 %v1909_v4, %v1908_v33  ;;  %v1847_v48 = vsel %vm1829_vm5, %v1822_v9, 0.0 }
 0x38b   : > { %v1777_v20 = vpop.xlane.xlu0 %1776  ;;  %v1519_v37 = vmul.f32 %v1503_v10, %v3402_v21  ;;  %v1845_v21 = vsel %vm1829_vm5, %v1821_v25, 0.0 }
 0x38c   : > { %v1883_v19 = vsel %vm428_vm0, %v1810_v47, 0.0  ;;  %v1480_v17 = vpop.xlane.xlu1 %1479  ;;  %v1795_v57 = vsub.f32 0.0, %v1777_v20  ;;  %v1846_v16 = vadd.f32 %v1845_v21, %v1844_v1 }
 0x38d   : > { %v1504_v26 = vsub.f32 0.0, %v1480_v17  ;;  %v1911_v50 = vsel %vm1829_vm5, %v1883_v19, 0.0  ;;  %v1823_v55 = vsel %vm425_vm13, %v1519_v37, 0.0 }
 0x38e   : > { %v1811_v14 = vmul.f32 %v1795_v57, %v378_v56  ;;  %v1912_v3 = vadd.f32 %v1911_v50, %v1910_v11  ;;  %v1849_v54 = vsel %vm1829_vm5, %v1823_v55, 0.0  ;;  %v1848_v34 = vadd.f32 %v1847_v48, %v1846_v16  ;;  %v3555_v50 = vld [vmem:[#allocation2_spill] sm:$0xff] }
 0x38f   : > { %v1780_v29 = vpop.xlane.xlu0 %1779  ;;  %v1520_v8 = vmul.f32 %v1504_v26, %v3416_v51  ;;  %vm1929_vm4 = vcmp.eq.s32.totalorder %v3555_v50, 1 }
 0x390   : > { %v1884_v31 = vsel %vm429_vm2, %v1811_v14, 0.0  ;;  %v1483_v46 = vpop.xlane.xlu1 %1482  ;;  %v1796_v58 = vsub.f32 0.0, %v1780_v29  ;;  %v1850_v5 = vadd.f32 %v1849_v54, %v1848_v34  ;;  %vm1930_vm6 = vmand %vm1926_vm3, %vm1929_vm4 }
 0x391   : > { %v1913_v43 = vsel %vm1829_vm5, %v1884_v31, 0.0  ;;  %v1505_v27 = vsub.f32 0.0, %v1483_v46  ;;  %v1824_v51 = vsel %vm426_vm14, %v1520_v8, 0.0 }
 0x392   : > { %v1812_v28 = vmul.f32 %v1796_v58, %v379_v63  ;;  %v1914_v42 = vadd.f32 %v1913_v43, %v1912_v3  ;;  %v1851_v62 = vsel %vm1829_vm5, %v1824_v51, 0.0 }
 0x393   : > { %v1521_v60 = vmul.f32 %v1505_v27, %v3428_v30  ;;  %v1852_v38 = vadd.f32 %v1851_v62, %v1850_v5 }
 0x394   : > { %v1885_v39 = vsel %vm430_vm1, %v1812_v28, 0.0  ;;  %v1486_v53 = vpop.xlane.xlu1 %1485 }
 0x395   : > { %v1506_v12 = vsub.f32 0.0, %v1486_v53  ;;  %v1915_v35 = vsel %vm1829_vm5, %v1885_v39, 0.0  ;;  %v1825_v32 = vsel %vm427_vm15, %v1521_v60, 0.0 }
 0x396   : > { %v1916_v24 = vadd.f32 %v1915_v35, %v1914_v42  ;;  %v1853_v0 = vsel %vm1829_vm5, %v1825_v32, 0.0 }
 0x397   : > { %v1522_v30 = vmul.f32 %v1506_v12, %v3448_v2  ;;  %v1854_v61 = vadd.f32 %v1853_v0, %v1852_v38 }
 0x398   : > { %v1489_v40 = vpop.xlane.xlu1 %1488  ;;  %1917 = vadd.xlane.f32.xlu0 %v1916_v24 }
 0x399   : > { %v1826_v41 = vsel %vm428_vm0, %v1522_v30, 0.0  ;;  %v1507_v59 = vsub.f32 0.0, %v1489_v40 }
 0x39a   : > { %v1855_v23 = vsel %vm1829_vm5, %v1826_v41, 0.0 }
 0x39b   : > { %v1523_v13 = vmul.f32 %v1507_v59, %v378_v56  ;;  %v1856_v18 = vadd.f32 %v1855_v23, %v1854_v61 }
 0x39c   : > { %v1492_v47 = vpop.xlane.xlu1 %1491 }
 0x39d   : > { %v1827_v2 = vsel %vm429_vm2, %v1523_v13, 0.0  ;;  %v1508_v15 = vsub.f32 0.0, %v1492_v47 }
 0x39e   : > { %v1857_v36 = vsel %vm1829_vm5, %v1827_v2, 0.0 }
 0x39f   : > { %v1524_v10 = vmul.f32 %v1508_v15, %v379_v63  ;;  %v1858_v20 = vadd.f32 %v1857_v36, %v1856_v18 }
 0x3a1   : > { %v1828_v22 = vsel %vm430_vm1, %v1524_v10, 0.0 }
 0x3a2   : > { %v1859_v44 = vsel %vm1829_vm5, %v1828_v22, 0.0  ;;  %vm1927_vm5 = vcmp.eq.s32.totalorder %v3555_v50, 0 }
 0x3a3   : > { %v1860_v19 = vadd.f32 %v1859_v44, %v1858_v20  ;;  %vm1928_vm7 = vmand %vm1926_vm3, %vm1927_vm5 }
 0x3a5   : > { %1861 = vadd.xlane.f32.xlu1 %v1860_v19 }
 0x425   : > { %v1918_v56 = vpop.xlane.xlu0 %1917 }
 0x426   : > { %v1919_v17 = vrot.slane %v1918_v56, 4 }
 0x428   : > { %v1920_v57 = vadd.f32 %v1919_v17, %v1918_v56 }
 0x42a   : > { %v1921_v45 = vrot.slane %v1920_v57, 2 }
 0x42c   : > { %v1922_v7 = vadd.f32 %v1921_v45, %v1920_v57 }
 0x42e   : > { %v1923_v1 = vrot.slane %v1922_v7, 1 }
 0x430   : > { %v1924_v37 = vadd.f32 %v1923_v1, %v1922_v7 }
 0x432   : > { %v1862_v49 = vpop.xlane.xlu1 %1861 }
 0x433   : > { %v1863_v4 = vrot.slane %v1862_v49, 4 }
 0x435   : > { %v1864_v26 = vadd.f32 %v1863_v4, %v1862_v49 }
 0x437   : > { %v1865_v33 = vrot.slane %v1864_v26, 2 }
 0x439   : > { %v1866_v14 = vadd.f32 %v1865_v33, %v1864_v26 }
 0x43b   : > { %v1867_v52 = vrot.slane %v1866_v14, 1 }
 0x43d   : > { %v1868_v25 = vadd.f32 %v1867_v52, %v1866_v14 }
 0x43f   : > { %2142 = vpush %v1868_v25 }
 0x440   : > { %2144 = vpush %v1924_v37 }
 0x470   : > { %s2143_s26 = spop %2142 }
 0x471   : > { %v1933_v63 = vstv %s2143_s26  ;;  %s2145_s27 = spop %2144 }
 0x472   : > { %v1931_v29 = vstv %s2145_s27 }
 0x473   : > { %v1932_v11 = vsel %vm1930_vm6, %v1931_v29, 0.0 }
 0x474   : > { %v1934_v31 = vsel %vm1928_vm7, %v1933_v63, %v1932_v11 }
 0x475   : > { %1935 = vst [vmem:[%s293_s30] sm:$0xff] %v1934_v31 }
 0x476 PF: > { %s15_s18 = sadd.s32 1, %s2330_s18  }
 0x477   : > { %p12_p5 = scmp.ge.s32.totalorder %s15_s18, 6  }
 0x479   :  { %14 = sbr.rel (!%p12_p5) target bundleno = 1 (0x1), region = 79 }

</bundles_post_ra>
